<compile_context>
chip_gen: v6e
topology: v6e:2x2x1
jax: 0.10.0
libtpu: 0.0.40
codegen_flags: <defaults>
</compile_context>

<pallas_src>
import time

import jax
import jax.numpy as jnp
from jax.experimental import pallas as pl
from jax.experimental.pallas import tpu as pltpu


def dc_node_rk4_kernel(
    x0_ref,      # (B, D_ext)      [x_ivps, zeros(d_q), ones(1)]  (const-1 lane last)
    xf_ref,      # (B, F)          flattened encoder features
    we1_ref,     # (F, He)         encoder layer 1 weight
    be1_ref,     # (B, He)         encoder layer 1 bias (pre-broadcast)
    we2_ref,     # (He, D_ext)     encoder layer 2 weight, embedded into lanes [d_in, d_in+d_q)
    be2_ref,     # (B, D_ext)      encoder layer 2 bias, embedded + pre-broadcast
    w1_ref,      # (D_ext, H)      dec layer 1 weight with b1 folded into the const-lane row
    w2_ref,      # (H, D_ext)      dec layer 2 weight, zero const-lane column (dz_const = 0)
    b2_ref,      # (B, D_ext)      dec layer 2 bias, zero const lane, pre-broadcast
    dt_ref,      # (T-1, B, D_ext) per-sample step sizes, pre-broadcast over lanes
    dth_ref,     # (T-1, B, D_ext) 0.5 * dt
    dt6_ref,     # (T-1, B, D_ext) dt / 6
    sol_ref,     # (T, B, D_ext)   output: solution at every time node (extended state)
):
    f32 = jnp.float32

    # ----- encoder + data-control augmentation: z0 = cat([x_ivps, enc(x_feats)], -1) -----
    he = jnp.tanh(
        jnp.dot(xf_ref[...], we1_ref[...], preferred_element_type=f32) + be1_ref[...]
    )
    q_emb = jnp.dot(he, we2_ref[...], preferred_element_type=f32) + be2_ref[...]
    z = x0_ref[...] + q_emb  # lanes: [x_ivps | enc(x_feats) | 1.0]

    w1 = w1_ref[...]   # b1 already folded into the const-lane row
    w2 = w2_ref[...]
    b2 = b2_ref[...]

    def f(zz):  # dec: the vector field (no "+ b1" add on the MXU->EUP chain)
        h = jnp.tanh(jnp.dot(zz, w1, preferred_element_type=f32))
        return jnp.dot(h, w2, preferred_element_type=f32) + b2

    T = sol_ref.shape[0]
    sol_ref[0] = z

    # Statically unrolled RK4 time loop (T is a compile-time constant): all dt reads
    # and solution stores use static indices; the scheduler sees the whole chain.
    # TODO(synk): for large T, switch to a grid axis over T-chunks with a z-carry
    #             VMEM scratch (bounds code size and vreg live ranges).
    for k in range(T - 1):
        dt = dt_ref[k]      # (B, D_ext) — pre-broadcast, pure elementwise multiplies below
        dth = dth_ref[k]
        dt6 = dt6_ref[k]
        k1 = f(z)
        acc = k1
        k2 = f(z + dth * k1)
        acc = acc + 2.0 * k2
        k3 = f(z + dth * k2)
        acc = acc + 2.0 * k3
        k4 = f(z + dt * k3)
        acc = acc + k4
        z = z + dt6 * acc
        sol_ref[k + 1] = z  # static-index store (output is VMEM-resident)


def dc_neural_ode_forward(x_ivps, x_feats, t_segments, params):
    """Mirrors DCNeuralODE.forward: returns (sol, forward_t).

    x_ivps     : (B, 1, d_in)
    x_feats    : (B, n_pts_enc, feat)
    t_segments : (B, T)   per-sample time nodes (padded to common T)
    params     : ((We1, be1, We2, be2), (W1, b1, W2, b2))
    """
    t0 = time.time()

    (we1, be1, we2, be2), (w1, b1, w2, b2) = params
    f32 = jnp.float32
    B, one, d_in = x_ivps.shape
    assert one == 1
    d_q = we2.shape[1]
    d_aug = d_in + d_q
    d_ext = d_aug + 1            # +1 constant lane used to fold b1 into w1
    h_enc = we1.shape[1]
    h_dec = w1.shape[1]

    # ---- one-time wrapper-side layout / algebra prep (off the kernel critical path) ----
    xf = x_feats.reshape(B, -1).astype(f32)                                 # (B, F)

    # Extended initial state: [x_ivps | zeros(d_q) | 1.0]
    x0 = jnp.concatenate(
        [x_ivps[:, 0, :].astype(f32),
         jnp.zeros((B, d_q), f32),
         jnp.ones((B, 1), f32)], axis=-1)                                   # (B, D_ext)

    # Embed encoder output into lanes [d_in, d_in + d_q) -> concat becomes an add.
    # Const lane column is zero so z0's const lane stays exactly 1.
    we2_emb = jnp.pad(we2.astype(f32), ((0, 0), (d_in, 1)))                 # (He, D_ext)
    be2_emb = jnp.broadcast_to(
        jnp.pad(be2.astype(f32), ((0, 0), (d_in, 1))), (B, d_ext))          # (B, D_ext)

    # Fold b1 into w1 via the constant-1 state lane: extra row of w1 = b1.
    w1_ext = jnp.concatenate([w1.astype(f32), b1.astype(f32).reshape(1, h_dec)], axis=0)
    # Zero const-lane output column in w2 / b2 so d(const lane)/dt == 0 exactly.
    w2_ext = jnp.pad(w2.astype(f32), ((0, 0), (0, 1)))                      # (H, D_ext)
    b2_ext = jnp.broadcast_to(
        jnp.pad(b2.astype(f32), ((0, 0), (0, 1))), (B, d_ext))              # (B, D_ext)

    # Pre-broadcast encoder bias once (JAX does not CSE broadcast_in_dim in the loop).
    be1_b = jnp.broadcast_to(be1.astype(f32), (B, h_enc))

    # Precompute per-sample step sizes (and the RK4 scalings), pre-broadcast over lanes
    # so every in-loop dt use is a pure elementwise multiply (no lane broadcast on-chain).
    t_tb = jnp.transpose(t_segments).astype(f32)                            # (T, B)
    T = t_tb.shape[0]
    dt = jnp.broadcast_to((t_tb[1:] - t_tb[:-1])[:, :, None], (T - 1, B, d_ext))
    dth = 0.5 * dt
    dt6 = dt / 6.0

    # TODO(synk): production sizes — add a "parallel" grid axis over batch (2 TCs on
    # v7x), tile the output over T with a BlockSpec + z-carry scratch if (T, B, D_ext)
    # no longer fits VMEM, pad lanes to 128 for lane-dense stores, and batch-stack so
    # the matmul M dimension fills an MXU block.
    sol = pl.pallas_call(
        dc_node_rk4_kernel,
        out_shape=jax.ShapeDtypeStruct((T, B, d_ext), f32),
        in_specs=[pl.BlockSpec(memory_space=pltpu.MemorySpace.VMEM)] * 12,
        out_specs=pl.BlockSpec(memory_space=pltpu.MemorySpace.VMEM),
    )(x0, xf, we1.astype(f32), be1_b, we2_emb, be2_emb,
      w1_ext, w2_ext, b2_ext, dt, dth, dt6)

    sol = sol[:, :, :d_aug]                     # drop the constant helper lane
    sol = sol[:, :, None, :]                    # (T, B, 1, D_aug): restore singleton dim
    sol = jax.block_until_ready(sol)            # time the actual solve, not just dispatch
    forward_t = time.time() - t0                # (first call also includes compilation)
    return sol, forward_t


def _reference_forward(x_ivps, x_feats, t_segments, params):
    """Pure-JAX reference (same math, no Pallas) for correctness checking."""
    (we1, be1, we2, be2), (w1, b1, w2, b2) = params
    B, _, d_in = x_ivps.shape
    xf = x_feats.reshape(B, -1)
    q = jnp.tanh(xf @ we1 + be1) @ we2 + be2
    z = jnp.concatenate([x_ivps[:, 0, :], q], axis=-1)

    t_tb = jnp.transpose(t_segments)
    T = t_tb.shape[0]

    def f(zz):
        return jnp.tanh(zz @ w1 + b1) @ w2 + b2

    outs = [z]
    for k in range(T - 1):
        dt = (t_tb[k + 1] - t_tb[k])[:, None]
        k1 = f(z)
        k2 = f(z + 0.5 * dt * k1)
        k3 = f(z + 0.5 * dt * k2)
        k4 = f(z + dt * k3)
        z = z + (dt / 6.0) * (k1 + 2.0 * k2 + 2.0 * k3 + k4)
        outs.append(z)
    return jnp.stack(outs, axis=0)[:, :, None, :]


if __name__ == "__main__":
    key = jax.random.PRNGKey(0)
    ks = jax.random.split(key, 10)

    # Small shapes consistent with the module's forward.
    B, D_IN, D_Q, N_PTS_ENC, FEAT, H_ENC, H_DEC, T = 4, 5, 3, 8, 4, 32, 32, 8
    D_AUG = D_IN + D_Q

    x_ivps = jax.random.normal(ks[0], (B, 1, D_IN), dtype=jnp.float32)
    x_feats = jax.random.normal(ks[1], (B, N_PTS_ENC, FEAT), dtype=jnp.float32)

    # Per-sample time segments (equal length; "jagged" spans differ per sample).
    ends = 0.5 + 0.25 * jnp.arange(B, dtype=jnp.float32)          # (B,)
    base = jnp.linspace(0.0, 1.0, T, dtype=jnp.float32)           # (T,)
    t_segments = ends[:, None] * base[None, :]                    # (B, T)

    # Deterministic enc / dec parameters.
    we1 = 0.3 * jax.random.normal(ks[2], (N_PTS_ENC * FEAT, H_ENC), dtype=jnp.float32)
    be1 = 0.1 * jax.random.normal(ks[3], (1, H_ENC), dtype=jnp.float32)
    we2 = 0.3 * jax.random.normal(ks[4], (H_ENC, D_Q), dtype=jnp.float32)
    be2 = 0.1 * jax.random.normal(ks[5], (1, D_Q), dtype=jnp.float32)
    w1 = 0.3 * jax.random.normal(ks[6], (D_AUG, H_DEC), dtype=jnp.float32)
    b1 = 0.1 * jax.random.normal(ks[7], (1, H_DEC), dtype=jnp.float32)
    w2 = 0.3 * jax.random.normal(ks[8], (H_DEC, D_AUG), dtype=jnp.float32)
    b2 = 0.1 * jax.random.normal(ks[9], (1, D_AUG), dtype=jnp.float32)
    params = ((we1, be1, we2, be2), (w1, b1, w2, b2))

    sol, forward_t = dc_neural_ode_forward(x_ivps, x_feats, t_segments, params)
    sol = jax.block_until_ready(sol)

    ref = _reference_forward(x_ivps, x_feats, t_segments, params)
    assert sol.shape == (T, B, 1, D_AUG), sol.shape
    assert jnp.allclose(sol, ref, atol=1e-5, rtol=1e-5), "Pallas kernel mismatch vs reference"
    assert forward_t > 0.0

    print("KERNEL_OK")
</pallas_src>

<mosaic_0001>
module attributes {stable_mosaic.version = 11 : i64} {
  func.func @dc_node_rk4_kernel(%arg0: memref<4x9xf32, #tpu.memory_space<vmem>>, %arg1: memref<4x32xf32, #tpu.memory_space<vmem>>, %arg2: memref<32x32xf32, #tpu.memory_space<vmem>>, %arg3: memref<4x32xf32, #tpu.memory_space<vmem>>, %arg4: memref<32x9xf32, #tpu.memory_space<vmem>>, %arg5: memref<4x9xf32, #tpu.memory_space<vmem>>, %arg6: memref<9x32xf32, #tpu.memory_space<vmem>>, %arg7: memref<32x9xf32, #tpu.memory_space<vmem>>, %arg8: memref<4x9xf32, #tpu.memory_space<vmem>>, %arg9: memref<7x4x9xf32, #tpu.memory_space<vmem>>, %arg10: memref<7x4x9xf32, #tpu.memory_space<vmem>>, %arg11: memref<7x4x9xf32, #tpu.memory_space<vmem>>, %arg12: memref<8x4x9xf32, #tpu.memory_space<vmem>>) attributes {dimension_semantics = [], scalar_prefetch = 0 : i64, scratch_operands = 0 : i64, tpu.core_type = #tpu.core_type<tc>} {
    %c0 = arith.constant 0 : index
    %c0_0 = arith.constant 0 : index
    %0 = vector.load %arg1[%c0, %c0_0] : memref<4x32xf32, #tpu.memory_space<vmem>>, vector<4x32xf32>
    %c0_1 = arith.constant 0 : index
    %c0_2 = arith.constant 0 : index
    %1 = vector.load %arg2[%c0_1, %c0_2] : memref<32x32xf32, #tpu.memory_space<vmem>>, vector<32x32xf32>
    %cst = arith.constant dense<0.000000e+00> : vector<4x32xf32>
    %2 = tpu.matmul %0, %1, %cst {dimension_numbers = #tpu.dot_dimension_numbers<[1], [0], [0], [1], [0, 0, 1, 1], [], []>} : vector<4x32xf32>, vector<32x32xf32>, vector<4x32xf32> -> vector<4x32xf32>
    %c0_3 = arith.constant 0 : index
    %c0_4 = arith.constant 0 : index
    %3 = vector.load %arg3[%c0_3, %c0_4] : memref<4x32xf32, #tpu.memory_space<vmem>>, vector<4x32xf32>
    %4 = arith.addf %2, %3 : vector<4x32xf32>
    %5 = math.tanh %4 : vector<4x32xf32>
    %c0_5 = arith.constant 0 : index
    %c0_6 = arith.constant 0 : index
    %6 = vector.load %arg4[%c0_5, %c0_6] : memref<32x9xf32, #tpu.memory_space<vmem>>, vector<32x9xf32>
    %cst_7 = arith.constant dense<0.000000e+00> : vector<4x9xf32>
    %7 = tpu.matmul %5, %6, %cst_7 {dimension_numbers = #tpu.dot_dimension_numbers<[1], [0], [0], [1], [0, 0, 1, 1], [], []>} : vector<4x32xf32>, vector<32x9xf32>, vector<4x9xf32> -> vector<4x9xf32>
    %c0_8 = arith.constant 0 : index
    %c0_9 = arith.constant 0 : index
    %8 = vector.load %arg5[%c0_8, %c0_9] : memref<4x9xf32, #tpu.memory_space<vmem>>, vector<4x9xf32>
    %9 = arith.addf %7, %8 : vector<4x9xf32>
    %c0_10 = arith.constant 0 : index
    %c0_11 = arith.constant 0 : index
    %10 = vector.load %arg0[%c0_10, %c0_11] : memref<4x9xf32, #tpu.memory_space<vmem>>, vector<4x9xf32>
    %11 = arith.addf %10, %9 : vector<4x9xf32>
    %c0_12 = arith.constant 0 : index
    %c0_13 = arith.constant 0 : index
    %12 = vector.load %arg6[%c0_12, %c0_13] : memref<9x32xf32, #tpu.memory_space<vmem>>, vector<9x32xf32>
    %c0_14 = arith.constant 0 : index
    %c0_15 = arith.constant 0 : index
    %13 = vector.load %arg7[%c0_14, %c0_15] : memref<32x9xf32, #tpu.memory_space<vmem>>, vector<32x9xf32>
    %c0_16 = arith.constant 0 : index
    %c0_17 = arith.constant 0 : index
    %14 = vector.load %arg8[%c0_16, %c0_17] : memref<4x9xf32, #tpu.memory_space<vmem>>, vector<4x9xf32>
    %c0_18 = arith.constant 0 : index
    %c0_19 = arith.constant 0 : index
    %c0_20 = arith.constant 0 : index
    %15 = vector.load %arg12[%c0_18, %c0_19, %c0_20] : memref<8x4x9xf32, #tpu.memory_space<vmem>>, vector<1x4x9xf32>
    %16 = vector.shape_cast %15 : vector<1x4x9xf32> to vector<4x9xf32>
    %17 = vector.shape_cast %11 : vector<4x9xf32> to vector<1x4x9xf32>
    tpu.vector_store %arg12[%c0_18, %c0_19, %c0_20], %17 {strides = array<i32>} : memref<8x4x9xf32, #tpu.memory_space<vmem>>, vector<1x4x9xf32>,
    %c0_21 = arith.constant 0 : index
    %c0_22 = arith.constant 0 : index
    %c0_23 = arith.constant 0 : index
    %18 = vector.load %arg9[%c0_21, %c0_22, %c0_23] : memref<7x4x9xf32, #tpu.memory_space<vmem>>, vector<1x4x9xf32>
    %19 = vector.shape_cast %18 : vector<1x4x9xf32> to vector<4x9xf32>
    %c0_24 = arith.constant 0 : index
    %c0_25 = arith.constant 0 : index
    %c0_26 = arith.constant 0 : index
    %20 = vector.load %arg10[%c0_24, %c0_25, %c0_26] : memref<7x4x9xf32, #tpu.memory_space<vmem>>, vector<1x4x9xf32>
    %21 = vector.shape_cast %20 : vector<1x4x9xf32> to vector<4x9xf32>
    %c0_27 = arith.constant 0 : index
    %c0_28 = arith.constant 0 : index
    %c0_29 = arith.constant 0 : index
    %22 = vector.load %arg11[%c0_27, %c0_28, %c0_29] : memref<7x4x9xf32, #tpu.memory_space<vmem>>, vector<1x4x9xf32>
    %23 = vector.shape_cast %22 : vector<1x4x9xf32> to vector<4x9xf32>
    %cst_30 = arith.constant dense<0.000000e+00> : vector<4x32xf32>
    %24 = tpu.matmul %11, %12, %cst_30 {dimension_numbers = #tpu.dot_dimension_numbers<[1], [0], [0], [1], [0, 0, 1, 1], [], []>} : vector<4x9xf32>, vector<9x32xf32>, vector<4x32xf32> -> vector<4x32xf32>
    %25 = math.tanh %24 : vector<4x32xf32>
    %cst_31 = arith.constant dense<0.000000e+00> : vector<4x9xf32>
    %26 = tpu.matmul %25, %13, %cst_31 {dimension_numbers = #tpu.dot_dimension_numbers<[1], [0], [0], [1], [0, 0, 1, 1], [], []>} : vector<4x32xf32>, vector<32x9xf32>, vector<4x9xf32> -> vector<4x9xf32>
    %27 = arith.addf %26, %14 : vector<4x9xf32>
    %28 = arith.mulf %21, %27 : vector<4x9xf32>
    %29 = arith.addf %11, %28 : vector<4x9xf32>
    %cst_32 = arith.constant dense<0.000000e+00> : vector<4x32xf32>
    %30 = tpu.matmul %29, %12, %cst_32 {dimension_numbers = #tpu.dot_dimension_numbers<[1], [0], [0], [1], [0, 0, 1, 1], [], []>} : vector<4x9xf32>, vector<9x32xf32>, vector<4x32xf32> -> vector<4x32xf32>
    %31 = math.tanh %30 : vector<4x32xf32>
    %cst_33 = arith.constant dense<0.000000e+00> : vector<4x9xf32>
    %32 = tpu.matmul %31, %13, %cst_33 {dimension_numbers = #tpu.dot_dimension_numbers<[1], [0], [0], [1], [0, 0, 1, 1], [], []>} : vector<4x32xf32>, vector<32x9xf32>, vector<4x9xf32> -> vector<4x9xf32>
    %33 = arith.addf %32, %14 : vector<4x9xf32>
    %cst_34 = arith.constant 2.000000e+00 : f32
    %34 = vector.broadcast %cst_34 : f32 to vector<4x9xf32>
    %35 = arith.mulf %34, %33 : vector<4x9xf32>
    %36 = arith.addf %27, %35 : vector<4x9xf32>
    %37 = arith.mulf %21, %33 : vector<4x9xf32>
    %38 = arith.addf %11, %37 : vector<4x9xf32>
    %cst_35 = arith.constant dense<0.000000e+00> : vector<4x32xf32>
    %39 = tpu.matmul %38, %12, %cst_35 {dimension_numbers = #tpu.dot_dimension_numbers<[1], [0], [0], [1], [0, 0, 1, 1], [], []>} : vector<4x9xf32>, vector<9x32xf32>, vector<4x32xf32> -> vector<4x32xf32>
    %40 = math.tanh %39 : vector<4x32xf32>
    %cst_36 = arith.constant dense<0.000000e+00> : vector<4x9xf32>
    %41 = tpu.matmul %40, %13, %cst_36 {dimension_numbers = #tpu.dot_dimension_numbers<[1], [0], [0], [1], [0, 0, 1, 1], [], []>} : vector<4x32xf32>, vector<32x9xf32>, vector<4x9xf32> -> vector<4x9xf32>
    %42 = arith.addf %41, %14 : vector<4x9xf32>
    %cst_37 = arith.constant 2.000000e+00 : f32
    %43 = vector.broadcast %cst_37 : f32 to vector<4x9xf32>
    %44 = arith.mulf %43, %42 : vector<4x9xf32>
    %45 = arith.addf %36, %44 : vector<4x9xf32>
    %46 = arith.mulf %19, %42 : vector<4x9xf32>
    %47 = arith.addf %11, %46 : vector<4x9xf32>
    %cst_38 = arith.constant dense<0.000000e+00> : vector<4x32xf32>
    %48 = tpu.matmul %47, %12, %cst_38 {dimension_numbers = #tpu.dot_dimension_numbers<[1], [0], [0], [1], [0, 0, 1, 1], [], []>} : vector<4x9xf32>, vector<9x32xf32>, vector<4x32xf32> -> vector<4x32xf32>
    %49 = math.tanh %48 : vector<4x32xf32>
    %cst_39 = arith.constant dense<0.000000e+00> : vector<4x9xf32>
    %50 = tpu.matmul %49, %13, %cst_39 {dimension_numbers = #tpu.dot_dimension_numbers<[1], [0], [0], [1], [0, 0, 1, 1], [], []>} : vector<4x32xf32>, vector<32x9xf32>, vector<4x9xf32> -> vector<4x9xf32>
    %51 = arith.addf %50, %14 : vector<4x9xf32>
    %52 = arith.addf %45, %51 : vector<4x9xf32>
    %53 = arith.mulf %23, %52 : vector<4x9xf32>
    %54 = arith.addf %11, %53 : vector<4x9xf32>
    %c1 = arith.constant 1 : index
    %c0_40 = arith.constant 0 : index
    %c0_41 = arith.constant 0 : index
    %55 = vector.load %arg12[%c1, %c0_40, %c0_41] : memref<8x4x9xf32, #tpu.memory_space<vmem>>, vector<1x4x9xf32>
    %56 = vector.shape_cast %55 : vector<1x4x9xf32> to vector<4x9xf32>
    %57 = vector.shape_cast %54 : vector<4x9xf32> to vector<1x4x9xf32>
    tpu.vector_store %arg12[%c1, %c0_40, %c0_41], %57 {strides = array<i32>} : memref<8x4x9xf32, #tpu.memory_space<vmem>>, vector<1x4x9xf32>,
    %c1_42 = arith.constant 1 : index
    %c0_43 = arith.constant 0 : index
    %c0_44 = arith.constant 0 : index
    %58 = vector.load %arg9[%c1_42, %c0_43, %c0_44] : memref<7x4x9xf32, #tpu.memory_space<vmem>>, vector<1x4x9xf32>
    %59 = vector.shape_cast %58 : vector<1x4x9xf32> to vector<4x9xf32>
    %c1_45 = arith.constant 1 : index
    %c0_46 = arith.constant 0 : index
    %c0_47 = arith.constant 0 : index
    %60 = vector.load %arg10[%c1_45, %c0_46, %c0_47] : memref<7x4x9xf32, #tpu.memory_space<vmem>>, vector<1x4x9xf32>
    %61 = vector.shape_cast %60 : vector<1x4x9xf32> to vector<4x9xf32>
    %c1_48 = arith.constant 1 : index
    %c0_49 = arith.constant 0 : index
    %c0_50 = arith.constant 0 : index
    %62 = vector.load %arg11[%c1_48, %c0_49, %c0_50] : memref<7x4x9xf32, #tpu.memory_space<vmem>>, vector<1x4x9xf32>
    %63 = vector.shape_cast %62 : vector<1x4x9xf32> to vector<4x9xf32>
    %cst_51 = arith.constant dense<0.000000e+00> : vector<4x32xf32>
    %64 = tpu.matmul %54, %12, %cst_51 {dimension_numbers = #tpu.dot_dimension_numbers<[1], [0], [0], [1], [0, 0, 1, 1], [], []>} : vector<4x9xf32>, vector<9x32xf32>, vector<4x32xf32> -> vector<4x32xf32>
    %65 = math.tanh %64 : vector<4x32xf32>
    %cst_52 = arith.constant dense<0.000000e+00> : vector<4x9xf32>
    %66 = tpu.matmul %65, %13, %cst_52 {dimension_numbers = #tpu.dot_dimension_numbers<[1], [0], [0], [1], [0, 0, 1, 1], [], []>} : vector<4x32xf32>, vector<32x9xf32>, vector<4x9xf32> -> vector<4x9xf32>
    %67 = arith.addf %66, %14 : vector<4x9xf32>
    %68 = arith.mulf %61, %67 : vector<4x9xf32>
    %69 = arith.addf %54, %68 : vector<4x9xf32>
    %cst_53 = arith.constant dense<0.000000e+00> : vector<4x32xf32>
    %70 = tpu.matmul %69, %12, %cst_53 {dimension_numbers = #tpu.dot_dimension_numbers<[1], [0], [0], [1], [0, 0, 1, 1], [], []>} : vector<4x9xf32>, vector<9x32xf32>, vector<4x32xf32> -> vector<4x32xf32>
    %71 = math.tanh %70 : vector<4x32xf32>
    %cst_54 = arith.constant dense<0.000000e+00> : vector<4x9xf32>
    %72 = tpu.matmul %71, %13, %cst_54 {dimension_numbers = #tpu.dot_dimension_numbers<[1], [0], [0], [1], [0, 0, 1, 1], [], []>} : vector<4x32xf32>, vector<32x9xf32>, vector<4x9xf32> -> vector<4x9xf32>
    %73 = arith.addf %72, %14 : vector<4x9xf32>
    %cst_55 = arith.constant 2.000000e+00 : f32
    %74 = vector.broadcast %cst_55 : f32 to vector<4x9xf32>
    %75 = arith.mulf %74, %73 : vector<4x9xf32>
    %76 = arith.addf %67, %75 : vector<4x9xf32>
    %77 = arith.mulf %61, %73 : vector<4x9xf32>
    %78 = arith.addf %54, %77 : vector<4x9xf32>
    %cst_56 = arith.constant dense<0.000000e+00> : vector<4x32xf32>
    %79 = tpu.matmul %78, %12, %cst_56 {dimension_numbers = #tpu.dot_dimension_numbers<[1], [0], [0], [1], [0, 0, 1, 1], [], []>} : vector<4x9xf32>, vector<9x32xf32>, vector<4x32xf32> -> vector<4x32xf32>
    %80 = math.tanh %79 : vector<4x32xf32>
    %cst_57 = arith.constant dense<0.000000e+00> : vector<4x9xf32>
    %81 = tpu.matmul %80, %13, %cst_57 {dimension_numbers = #tpu.dot_dimension_numbers<[1], [0], [0], [1], [0, 0, 1, 1], [], []>} : vector<4x32xf32>, vector<32x9xf32>, vector<4x9xf32> -> vector<4x9xf32>
    %82 = arith.addf %81, %14 : vector<4x9xf32>
    %cst_58 = arith.constant 2.000000e+00 : f32
    %83 = vector.broadcast %cst_58 : f32 to vector<4x9xf32>
    %84 = arith.mulf %83, %82 : vector<4x9xf32>
    %85 = arith.addf %76, %84 : vector<4x9xf32>
    %86 = arith.mulf %59, %82 : vector<4x9xf32>
    %87 = arith.addf %54, %86 : vector<4x9xf32>
    %cst_59 = arith.constant dense<0.000000e+00> : vector<4x32xf32>
    %88 = tpu.matmul %87, %12, %cst_59 {dimension_numbers = #tpu.dot_dimension_numbers<[1], [0], [0], [1], [0, 0, 1, 1], [], []>} : vector<4x9xf32>, vector<9x32xf32>, vector<4x32xf32> -> vector<4x32xf32>
    %89 = math.tanh %88 : vector<4x32xf32>
    %cst_60 = arith.constant dense<0.000000e+00> : vector<4x9xf32>
    %90 = tpu.matmul %89, %13, %cst_60 {dimension_numbers = #tpu.dot_dimension_numbers<[1], [0], [0], [1], [0, 0, 1, 1], [], []>} : vector<4x32xf32>, vector<32x9xf32>, vector<4x9xf32> -> vector<4x9xf32>
    %91 = arith.addf %90, %14 : vector<4x9xf32>
    %92 = arith.addf %85, %91 : vector<4x9xf32>
    %93 = arith.mulf %63, %92 : vector<4x9xf32>
    %94 = arith.addf %54, %93 : vector<4x9xf32>
    %c2 = arith.constant 2 : index
    %c0_61 = arith.constant 0 : index
    %c0_62 = arith.constant 0 : index
    %95 = vector.load %arg12[%c2, %c0_61, %c0_62] : memref<8x4x9xf32, #tpu.memory_space<vmem>>, vector<1x4x9xf32>
    %96 = vector.shape_cast %95 : vector<1x4x9xf32> to vector<4x9xf32>
    %97 = vector.shape_cast %94 : vector<4x9xf32> to vector<1x4x9xf32>
    tpu.vector_store %arg12[%c2, %c0_61, %c0_62], %97 {strides = array<i32>} : memref<8x4x9xf32, #tpu.memory_space<vmem>>, vector<1x4x9xf32>,
    %c2_63 = arith.constant 2 : index
    %c0_64 = arith.constant 0 : index
    %c0_65 = arith.constant 0 : index
    %98 = vector.load %arg9[%c2_63, %c0_64, %c0_65] : memref<7x4x9xf32, #tpu.memory_space<vmem>>, vector<1x4x9xf32>
    %99 = vector.shape_cast %98 : vector<1x4x9xf32> to vector<4x9xf32>
    %c2_66 = arith.constant 2 : index
    %c0_67 = arith.constant 0 : index
    %c0_68 = arith.constant 0 : index
    %100 = vector.load %arg10[%c2_66, %c0_67, %c0_68] : memref<7x4x9xf32, #tpu.memory_space<vmem>>, vector<1x4x9xf32>
    %101 = vector.shape_cast %100 : vector<1x4x9xf32> to vector<4x9xf32>
    %c2_69 = arith.constant 2 : index
    %c0_70 = arith.constant 0 : index
    %c0_71 = arith.constant 0 : index
    %102 = vector.load %arg11[%c2_69, %c0_70, %c0_71] : memref<7x4x9xf32, #tpu.memory_space<vmem>>, vector<1x4x9xf32>
    %103 = vector.shape_cast %102 : vector<1x4x9xf32> to vector<4x9xf32>
    %cst_72 = arith.constant dense<0.000000e+00> : vector<4x32xf32>
    %104 = tpu.matmul %94, %12, %cst_72 {dimension_numbers = #tpu.dot_dimension_numbers<[1], [0], [0], [1], [0, 0, 1, 1], [], []>} : vector<4x9xf32>, vector<9x32xf32>, vector<4x32xf32> -> vector<4x32xf32>
    %105 = math.tanh %104 : vector<4x32xf32>
    %cst_73 = arith.constant dense<0.000000e+00> : vector<4x9xf32>
    %106 = tpu.matmul %105, %13, %cst_73 {dimension_numbers = #tpu.dot_dimension_numbers<[1], [0], [0], [1], [0, 0, 1, 1], [], []>} : vector<4x32xf32>, vector<32x9xf32>, vector<4x9xf32> -> vector<4x9xf32>
    %107 = arith.addf %106, %14 : vector<4x9xf32>
    %108 = arith.mulf %101, %107 : vector<4x9xf32>
    %109 = arith.addf %94, %108 : vector<4x9xf32>
    %cst_74 = arith.constant dense<0.000000e+00> : vector<4x32xf32>
    %110 = tpu.matmul %109, %12, %cst_74 {dimension_numbers = #tpu.dot_dimension_numbers<[1], [0], [0], [1], [0, 0, 1, 1], [], []>} : vector<4x9xf32>, vector<9x32xf32>, vector<4x32xf32> -> vector<4x32xf32>
    %111 = math.tanh %110 : vector<4x32xf32>
    %cst_75 = arith.constant dense<0.000000e+00> : vector<4x9xf32>
    %112 = tpu.matmul %111, %13, %cst_75 {dimension_numbers = #tpu.dot_dimension_numbers<[1], [0], [0], [1], [0, 0, 1, 1], [], []>} : vector<4x32xf32>, vector<32x9xf32>, vector<4x9xf32> -> vector<4x9xf32>
    %113 = arith.addf %112, %14 : vector<4x9xf32>
    %cst_76 = arith.constant 2.000000e+00 : f32
    %114 = vector.broadcast %cst_76 : f32 to vector<4x9xf32>
    %115 = arith.mulf %114, %113 : vector<4x9xf32>
    %116 = arith.addf %107, %115 : vector<4x9xf32>
    %117 = arith.mulf %101, %113 : vector<4x9xf32>
    %118 = arith.addf %94, %117 : vector<4x9xf32>
    %cst_77 = arith.constant dense<0.000000e+00> : vector<4x32xf32>
    %119 = tpu.matmul %118, %12, %cst_77 {dimension_numbers = #tpu.dot_dimension_numbers<[1], [0], [0], [1], [0, 0, 1, 1], [], []>} : vector<4x9xf32>, vector<9x32xf32>, vector<4x32xf32> -> vector<4x32xf32>
    %120 = math.tanh %119 : vector<4x32xf32>
    %cst_78 = arith.constant dense<0.000000e+00> : vector<4x9xf32>
    %121 = tpu.matmul %120, %13, %cst_78 {dimension_numbers = #tpu.dot_dimension_numbers<[1], [0], [0], [1], [0, 0, 1, 1], [], []>} : vector<4x32xf32>, vector<32x9xf32>, vector<4x9xf32> -> vector<4x9xf32>
    %122 = arith.addf %121, %14 : vector<4x9xf32>
    %cst_79 = arith.constant 2.000000e+00 : f32
    %123 = vector.broadcast %cst_79 : f32 to vector<4x9xf32>
    %124 = arith.mulf %123, %122 : vector<4x9xf32>
    %125 = arith.addf %116, %124 : vector<4x9xf32>
    %126 = arith.mulf %99, %122 : vector<4x9xf32>
    %127 = arith.addf %94, %126 : vector<4x9xf32>
    %cst_80 = arith.constant dense<0.000000e+00> : vector<4x32xf32>
    %128 = tpu.matmul %127, %12, %cst_80 {dimension_numbers = #tpu.dot_dimension_numbers<[1], [0], [0], [1], [0, 0, 1, 1], [], []>} : vector<4x9xf32>, vector<9x32xf32>, vector<4x32xf32> -> vector<4x32xf32>
    %129 = math.tanh %128 : vector<4x32xf32>
    %cst_81 = arith.constant dense<0.000000e+00> : vector<4x9xf32>
    %130 = tpu.matmul %129, %13, %cst_81 {dimension_numbers = #tpu.dot_dimension_numbers<[1], [0], [0], [1], [0, 0, 1, 1], [], []>} : vector<4x32xf32>, vector<32x9xf32>, vector<4x9xf32> -> vector<4x9xf32>
    %131 = arith.addf %130, %14 : vector<4x9xf32>
    %132 = arith.addf %125, %131 : vector<4x9xf32>
    %133 = arith.mulf %103, %132 : vector<4x9xf32>
    %134 = arith.addf %94, %133 : vector<4x9xf32>
    %c3 = arith.constant 3 : index
    %c0_82 = arith.constant 0 : index
    %c0_83 = arith.constant 0 : index
    %135 = vector.load %arg12[%c3, %c0_82, %c0_83] : memref<8x4x9xf32, #tpu.memory_space<vmem>>, vector<1x4x9xf32>
    %136 = vector.shape_cast %135 : vector<1x4x9xf32> to vector<4x9xf32>
    %137 = vector.shape_cast %134 : vector<4x9xf32> to vector<1x4x9xf32>
    tpu.vector_store %arg12[%c3, %c0_82, %c0_83], %137 {strides = array<i32>} : memref<8x4x9xf32, #tpu.memory_space<vmem>>, vector<1x4x9xf32>,
    %c3_84 = arith.constant 3 : index
    %c0_85 = arith.constant 0 : index
    %c0_86 = arith.constant 0 : index
    %138 = vector.load %arg9[%c3_84, %c0_85, %c0_86] : memref<7x4x9xf32, #tpu.memory_space<vmem>>, vector<1x4x9xf32>
    %139 = vector.shape_cast %138 : vector<1x4x9xf32> to vector<4x9xf32>
    %c3_87 = arith.constant 3 : index
    %c0_88 = arith.constant 0 : index
    %c0_89 = arith.constant 0 : index
    %140 = vector.load %arg10[%c3_87, %c0_88, %c0_89] : memref<7x4x9xf32, #tpu.memory_space<vmem>>, vector<1x4x9xf32>
    %141 = vector.shape_cast %140 : vector<1x4x9xf32> to vector<4x9xf32>
    %c3_90 = arith.constant 3 : index
    %c0_91 = arith.constant 0 : index
    %c0_92 = arith.constant 0 : index
    %142 = vector.load %arg11[%c3_90, %c0_91, %c0_92] : memref<7x4x9xf32, #tpu.memory_space<vmem>>, vector<1x4x9xf32>
    %143 = vector.shape_cast %142 : vector<1x4x9xf32> to vector<4x9xf32>
    %cst_93 = arith.constant dense<0.000000e+00> : vector<4x32xf32>
    %144 = tpu.matmul %134, %12, %cst_93 {dimension_numbers = #tpu.dot_dimension_numbers<[1], [0], [0], [1], [0, 0, 1, 1], [], []>} : vector<4x9xf32>, vector<9x32xf32>, vector<4x32xf32> -> vector<4x32xf32>
    %145 = math.tanh %144 : vector<4x32xf32>
    %cst_94 = arith.constant dense<0.000000e+00> : vector<4x9xf32>
    %146 = tpu.matmul %145, %13, %cst_94 {dimension_numbers = #tpu.dot_dimension_numbers<[1], [0], [0], [1], [0, 0, 1, 1], [], []>} : vector<4x32xf32>, vector<32x9xf32>, vector<4x9xf32> -> vector<4x9xf32>
    %147 = arith.addf %146, %14 : vector<4x9xf32>
    %148 = arith.mulf %141, %147 : vector<4x9xf32>
    %149 = arith.addf %134, %148 : vector<4x9xf32>
    %cst_95 = arith.constant dense<0.000000e+00> : vector<4x32xf32>
    %150 = tpu.matmul %149, %12, %cst_95 {dimension_numbers = #tpu.dot_dimension_numbers<[1], [0], [0], [1], [0, 0, 1, 1], [], []>} : vector<4x9xf32>, vector<9x32xf32>, vector<4x32xf32> -> vector<4x32xf32>
    %151 = math.tanh %150 : vector<4x32xf32>
    %cst_96 = arith.constant dense<0.000000e+00> : vector<4x9xf32>
    %152 = tpu.matmul %151, %13, %cst_96 {dimension_numbers = #tpu.dot_dimension_numbers<[1], [0], [0], [1], [0, 0, 1, 1], [], []>} : vector<4x32xf32>, vector<32x9xf32>, vector<4x9xf32> -> vector<4x9xf32>
    %153 = arith.addf %152, %14 : vector<4x9xf32>
    %cst_97 = arith.constant 2.000000e+00 : f32
    %154 = vector.broadcast %cst_97 : f32 to vector<4x9xf32>
    %155 = arith.mulf %154, %153 : vector<4x9xf32>
    %156 = arith.addf %147, %155 : vector<4x9xf32>
    %157 = arith.mulf %141, %153 : vector<4x9xf32>
    %158 = arith.addf %134, %157 : vector<4x9xf32>
    %cst_98 = arith.constant dense<0.000000e+00> : vector<4x32xf32>
    %159 = tpu.matmul %158, %12, %cst_98 {dimension_numbers = #tpu.dot_dimension_numbers<[1], [0], [0], [1], [0, 0, 1, 1], [], []>} : vector<4x9xf32>, vector<9x32xf32>, vector<4x32xf32> -> vector<4x32xf32>
    %160 = math.tanh %159 : vector<4x32xf32>
    %cst_99 = arith.constant dense<0.000000e+00> : vector<4x9xf32>
    %161 = tpu.matmul %160, %13, %cst_99 {dimension_numbers = #tpu.dot_dimension_numbers<[1], [0], [0], [1], [0, 0, 1, 1], [], []>} : vector<4x32xf32>, vector<32x9xf32>, vector<4x9xf32> -> vector<4x9xf32>
    %162 = arith.addf %161, %14 : vector<4x9xf32>
    %cst_100 = arith.constant 2.000000e+00 : f32
    %163 = vector.broadcast %cst_100 : f32 to vector<4x9xf32>
    %164 = arith.mulf %163, %162 : vector<4x9xf32>
    %165 = arith.addf %156, %164 : vector<4x9xf32>
    %166 = arith.mulf %139, %162 : vector<4x9xf32>
    %167 = arith.addf %134, %166 : vector<4x9xf32>
    %cst_101 = arith.constant dense<0.000000e+00> : vector<4x32xf32>
    %168 = tpu.matmul %167, %12, %cst_101 {dimension_numbers = #tpu.dot_dimension_numbers<[1], [0], [0], [1], [0, 0, 1, 1], [], []>} : vector<4x9xf32>, vector<9x32xf32>, vector<4x32xf32> -> vector<4x32xf32>
    %169 = math.tanh %168 : vector<4x32xf32>
    %cst_102 = arith.constant dense<0.000000e+00> : vector<4x9xf32>
    %170 = tpu.matmul %169, %13, %cst_102 {dimension_numbers = #tpu.dot_dimension_numbers<[1], [0], [0], [1], [0, 0, 1, 1], [], []>} : vector<4x32xf32>, vector<32x9xf32>, vector<4x9xf32> -> vector<4x9xf32>
    %171 = arith.addf %170, %14 : vector<4x9xf32>
    %172 = arith.addf %165, %171 : vector<4x9xf32>
    %173 = arith.mulf %143, %172 : vector<4x9xf32>
    %174 = arith.addf %134, %173 : vector<4x9xf32>
    %c4 = arith.constant 4 : index
    %c0_103 = arith.constant 0 : index
    %c0_104 = arith.constant 0 : index
    %175 = vector.load %arg12[%c4, %c0_103, %c0_104] : memref<8x4x9xf32, #tpu.memory_space<vmem>>, vector<1x4x9xf32>
    %176 = vector.shape_cast %175 : vector<1x4x9xf32> to vector<4x9xf32>
    %177 = vector.shape_cast %174 : vector<4x9xf32> to vector<1x4x9xf32>
    tpu.vector_store %arg12[%c4, %c0_103, %c0_104], %177 {strides = array<i32>} : memref<8x4x9xf32, #tpu.memory_space<vmem>>, vector<1x4x9xf32>,
    %c4_105 = arith.constant 4 : index
    %c0_106 = arith.constant 0 : index
    %c0_107 = arith.constant 0 : index
    %178 = vector.load %arg9[%c4_105, %c0_106, %c0_107] : memref<7x4x9xf32, #tpu.memory_space<vmem>>, vector<1x4x9xf32>
    %179 = vector.shape_cast %178 : vector<1x4x9xf32> to vector<4x9xf32>
    %c4_108 = arith.constant 4 : index
    %c0_109 = arith.constant 0 : index
    %c0_110 = arith.constant 0 : index
    %180 = vector.load %arg10[%c4_108, %c0_109, %c0_110] : memref<7x4x9xf32, #tpu.memory_space<vmem>>, vector<1x4x9xf32>
    %181 = vector.shape_cast %180 : vector<1x4x9xf32> to vector<4x9xf32>
    %c4_111 = arith.constant 4 : index
    %c0_112 = arith.constant 0 : index
    %c0_113 = arith.constant 0 : index
    %182 = vector.load %arg11[%c4_111, %c0_112, %c0_113] : memref<7x4x9xf32, #tpu.memory_space<vmem>>, vector<1x4x9xf32>
    %183 = vector.shape_cast %182 : vector<1x4x9xf32> to vector<4x9xf32>
    %cst_114 = arith.constant dense<0.000000e+00> : vector<4x32xf32>
    %184 = tpu.matmul %174, %12, %cst_114 {dimension_numbers = #tpu.dot_dimension_numbers<[1], [0], [0], [1], [0, 0, 1, 1], [], []>} : vector<4x9xf32>, vector<9x32xf32>, vector<4x32xf32> -> vector<4x32xf32>
    %185 = math.tanh %184 : vector<4x32xf32>
    %cst_115 = arith.constant dense<0.000000e+00> : vector<4x9xf32>
    %186 = tpu.matmul %185, %13, %cst_115 {dimension_numbers = #tpu.dot_dimension_numbers<[1], [0], [0], [1], [0, 0, 1, 1], [], []>} : vector<4x32xf32>, vector<32x9xf32>, vector<4x9xf32> -> vector<4x9xf32>
    %187 = arith.addf %186, %14 : vector<4x9xf32>
    %188 = arith.mulf %181, %187 : vector<4x9xf32>
    %189 = arith.addf %174, %188 : vector<4x9xf32>
    %cst_116 = arith.constant dense<0.000000e+00> : vector<4x32xf32>
    %190 = tpu.matmul %189, %12, %cst_116 {dimension_numbers = #tpu.dot_dimension_numbers<[1], [0], [0], [1], [0, 0, 1, 1], [], []>} : vector<4x9xf32>, vector<9x32xf32>, vector<4x32xf32> -> vector<4x32xf32>
    %191 = math.tanh %190 : vector<4x32xf32>
    %cst_117 = arith.constant dense<0.000000e+00> : vector<4x9xf32>
    %192 = tpu.matmul %191, %13, %cst_117 {dimension_numbers = #tpu.dot_dimension_numbers<[1], [0], [0], [1], [0, 0, 1, 1], [], []>} : vector<4x32xf32>, vector<32x9xf32>, vector<4x9xf32> -> vector<4x9xf32>
    %193 = arith.addf %192, %14 : vector<4x9xf32>
    %cst_118 = arith.constant 2.000000e+00 : f32
    %194 = vector.broadcast %cst_118 : f32 to vector<4x9xf32>
    %195 = arith.mulf %194, %193 : vector<4x9xf32>
    %196 = arith.addf %187, %195 : vector<4x9xf32>
    %197 = arith.mulf %181, %193 : vector<4x9xf32>
    %198 = arith.addf %174, %197 : vector<4x9xf32>
    %cst_119 = arith.constant dense<0.000000e+00> : vector<4x32xf32>
    %199 = tpu.matmul %198, %12, %cst_119 {dimension_numbers = #tpu.dot_dimension_numbers<[1], [0], [0], [1], [0, 0, 1, 1], [], []>} : vector<4x9xf32>, vector<9x32xf32>, vector<4x32xf32> -> vector<4x32xf32>
    %200 = math.tanh %199 : vector<4x32xf32>
    %cst_120 = arith.constant dense<0.000000e+00> : vector<4x9xf32>
    %201 = tpu.matmul %200, %13, %cst_120 {dimension_numbers = #tpu.dot_dimension_numbers<[1], [0], [0], [1], [0, 0, 1, 1], [], []>} : vector<4x32xf32>, vector<32x9xf32>, vector<4x9xf32> -> vector<4x9xf32>
    %202 = arith.addf %201, %14 : vector<4x9xf32>
    %cst_121 = arith.constant 2.000000e+00 : f32
    %203 = vector.broadcast %cst_121 : f32 to vector<4x9xf32>
    %204 = arith.mulf %203, %202 : vector<4x9xf32>
    %205 = arith.addf %196, %204 : vector<4x9xf32>
    %206 = arith.mulf %179, %202 : vector<4x9xf32>
    %207 = arith.addf %174, %206 : vector<4x9xf32>
    %cst_122 = arith.constant dense<0.000000e+00> : vector<4x32xf32>
    %208 = tpu.matmul %207, %12, %cst_122 {dimension_numbers = #tpu.dot_dimension_numbers<[1], [0], [0], [1], [0, 0, 1, 1], [], []>} : vector<4x9xf32>, vector<9x32xf32>, vector<4x32xf32> -> vector<4x32xf32>
    %209 = math.tanh %208 : vector<4x32xf32>
    %cst_123 = arith.constant dense<0.000000e+00> : vector<4x9xf32>
    %210 = tpu.matmul %209, %13, %cst_123 {dimension_numbers = #tpu.dot_dimension_numbers<[1], [0], [0], [1], [0, 0, 1, 1], [], []>} : vector<4x32xf32>, vector<32x9xf32>, vector<4x9xf32> -> vector<4x9xf32>
    %211 = arith.addf %210, %14 : vector<4x9xf32>
    %212 = arith.addf %205, %211 : vector<4x9xf32>
    %213 = arith.mulf %183, %212 : vector<4x9xf32>
    %214 = arith.addf %174, %213 : vector<4x9xf32>
    %c5 = arith.constant 5 : index
    %c0_124 = arith.constant 0 : index
    %c0_125 = arith.constant 0 : index
    %215 = vector.load %arg12[%c5, %c0_124, %c0_125] : memref<8x4x9xf32, #tpu.memory_space<vmem>>, vector<1x4x9xf32>
    %216 = vector.shape_cast %215 : vector<1x4x9xf32> to vector<4x9xf32>
    %217 = vector.shape_cast %214 : vector<4x9xf32> to vector<1x4x9xf32>
    tpu.vector_store %arg12[%c5, %c0_124, %c0_125], %217 {strides = array<i32>} : memref<8x4x9xf32, #tpu.memory_space<vmem>>, vector<1x4x9xf32>,
    %c5_126 = arith.constant 5 : index
    %c0_127 = arith.constant 0 : index
    %c0_128 = arith.constant 0 : index
    %218 = vector.load %arg9[%c5_126, %c0_127, %c0_128] : memref<7x4x9xf32, #tpu.memory_space<vmem>>, vector<1x4x9xf32>
    %219 = vector.shape_cast %218 : vector<1x4x9xf32> to vector<4x9xf32>
    %c5_129 = arith.constant 5 : index
    %c0_130 = arith.constant 0 : index
    %c0_131 = arith.constant 0 : index
    %220 = vector.load %arg10[%c5_129, %c0_130, %c0_131] : memref<7x4x9xf32, #tpu.memory_space<vmem>>, vector<1x4x9xf32>
    %221 = vector.shape_cast %220 : vector<1x4x9xf32> to vector<4x9xf32>
    %c5_132 = arith.constant 5 : index
    %c0_133 = arith.constant 0 : index
    %c0_134 = arith.constant 0 : index
    %222 = vector.load %arg11[%c5_132, %c0_133, %c0_134] : memref<7x4x9xf32, #tpu.memory_space<vmem>>, vector<1x4x9xf32>
    %223 = vector.shape_cast %222 : vector<1x4x9xf32> to vector<4x9xf32>
    %cst_135 = arith.constant dense<0.000000e+00> : vector<4x32xf32>
    %224 = tpu.matmul %214, %12, %cst_135 {dimension_numbers = #tpu.dot_dimension_numbers<[1], [0], [0], [1], [0, 0, 1, 1], [], []>} : vector<4x9xf32>, vector<9x32xf32>, vector<4x32xf32> -> vector<4x32xf32>
    %225 = math.tanh %224 : vector<4x32xf32>
    %cst_136 = arith.constant dense<0.000000e+00> : vector<4x9xf32>
    %226 = tpu.matmul %225, %13, %cst_136 {dimension_numbers = #tpu.dot_dimension_numbers<[1], [0], [0], [1], [0, 0, 1, 1], [], []>} : vector<4x32xf32>, vector<32x9xf32>, vector<4x9xf32> -> vector<4x9xf32>
    %227 = arith.addf %226, %14 : vector<4x9xf32>
    %228 = arith.mulf %221, %227 : vector<4x9xf32>
    %229 = arith.addf %214, %228 : vector<4x9xf32>
    %cst_137 = arith.constant dense<0.000000e+00> : vector<4x32xf32>
    %230 = tpu.matmul %229, %12, %cst_137 {dimension_numbers = #tpu.dot_dimension_numbers<[1], [0], [0], [1], [0, 0, 1, 1], [], []>} : vector<4x9xf32>, vector<9x32xf32>, vector<4x32xf32> -> vector<4x32xf32>
    %231 = math.tanh %230 : vector<4x32xf32>
    %cst_138 = arith.constant dense<0.000000e+00> : vector<4x9xf32>
    %232 = tpu.matmul %231, %13, %cst_138 {dimension_numbers = #tpu.dot_dimension_numbers<[1], [0], [0], [1], [0, 0, 1, 1], [], []>} : vector<4x32xf32>, vector<32x9xf32>, vector<4x9xf32> -> vector<4x9xf32>
    %233 = arith.addf %232, %14 : vector<4x9xf32>
    %cst_139 = arith.constant 2.000000e+00 : f32
    %234 = vector.broadcast %cst_139 : f32 to vector<4x9xf32>
    %235 = arith.mulf %234, %233 : vector<4x9xf32>
    %236 = arith.addf %227, %235 : vector<4x9xf32>
    %237 = arith.mulf %221, %233 : vector<4x9xf32>
    %238 = arith.addf %214, %237 : vector<4x9xf32>
    %cst_140 = arith.constant dense<0.000000e+00> : vector<4x32xf32>
    %239 = tpu.matmul %238, %12, %cst_140 {dimension_numbers = #tpu.dot_dimension_numbers<[1], [0], [0], [1], [0, 0, 1, 1], [], []>} : vector<4x9xf32>, vector<9x32xf32>, vector<4x32xf32> -> vector<4x32xf32>
    %240 = math.tanh %239 : vector<4x32xf32>
    %cst_141 = arith.constant dense<0.000000e+00> : vector<4x9xf32>
    %241 = tpu.matmul %240, %13, %cst_141 {dimension_numbers = #tpu.dot_dimension_numbers<[1], [0], [0], [1], [0, 0, 1, 1], [], []>} : vector<4x32xf32>, vector<32x9xf32>, vector<4x9xf32> -> vector<4x9xf32>
    %242 = arith.addf %241, %14 : vector<4x9xf32>
    %cst_142 = arith.constant 2.000000e+00 : f32
    %243 = vector.broadcast %cst_142 : f32 to vector<4x9xf32>
    %244 = arith.mulf %243, %242 : vector<4x9xf32>
    %245 = arith.addf %236, %244 : vector<4x9xf32>
    %246 = arith.mulf %219, %242 : vector<4x9xf32>
    %247 = arith.addf %214, %246 : vector<4x9xf32>
    %cst_143 = arith.constant dense<0.000000e+00> : vector<4x32xf32>
    %248 = tpu.matmul %247, %12, %cst_143 {dimension_numbers = #tpu.dot_dimension_numbers<[1], [0], [0], [1], [0, 0, 1, 1], [], []>} : vector<4x9xf32>, vector<9x32xf32>, vector<4x32xf32> -> vector<4x32xf32>
    %249 = math.tanh %248 : vector<4x32xf32>
    %cst_144 = arith.constant dense<0.000000e+00> : vector<4x9xf32>
    %250 = tpu.matmul %249, %13, %cst_144 {dimension_numbers = #tpu.dot_dimension_numbers<[1], [0], [0], [1], [0, 0, 1, 1], [], []>} : vector<4x32xf32>, vector<32x9xf32>, vector<4x9xf32> -> vector<4x9xf32>
    %251 = arith.addf %250, %14 : vector<4x9xf32>
    %252 = arith.addf %245, %251 : vector<4x9xf32>
    %253 = arith.mulf %223, %252 : vector<4x9xf32>
    %254 = arith.addf %214, %253 : vector<4x9xf32>
    %c6 = arith.constant 6 : index
    %c0_145 = arith.constant 0 : index
    %c0_146 = arith.constant 0 : index
    %255 = vector.load %arg12[%c6, %c0_145, %c0_146] : memref<8x4x9xf32, #tpu.memory_space<vmem>>, vector<1x4x9xf32>
    %256 = vector.shape_cast %255 : vector<1x4x9xf32> to vector<4x9xf32>
    %257 = vector.shape_cast %254 : vector<4x9xf32> to vector<1x4x9xf32>
    tpu.vector_store %arg12[%c6, %c0_145, %c0_146], %257 {strides = array<i32>} : memref<8x4x9xf32, #tpu.memory_space<vmem>>, vector<1x4x9xf32>,
    %c6_147 = arith.constant 6 : index
    %c0_148 = arith.constant 0 : index
    %c0_149 = arith.constant 0 : index
    %258 = vector.load %arg9[%c6_147, %c0_148, %c0_149] : memref<7x4x9xf32, #tpu.memory_space<vmem>>, vector<1x4x9xf32>
    %259 = vector.shape_cast %258 : vector<1x4x9xf32> to vector<4x9xf32>
    %c6_150 = arith.constant 6 : index
    %c0_151 = arith.constant 0 : index
    %c0_152 = arith.constant 0 : index
    %260 = vector.load %arg10[%c6_150, %c0_151, %c0_152] : memref<7x4x9xf32, #tpu.memory_space<vmem>>, vector<1x4x9xf32>
    %261 = vector.shape_cast %260 : vector<1x4x9xf32> to vector<4x9xf32>
    %c6_153 = arith.constant 6 : index
    %c0_154 = arith.constant 0 : index
    %c0_155 = arith.constant 0 : index
    %262 = vector.load %arg11[%c6_153, %c0_154, %c0_155] : memref<7x4x9xf32, #tpu.memory_space<vmem>>, vector<1x4x9xf32>
    %263 = vector.shape_cast %262 : vector<1x4x9xf32> to vector<4x9xf32>
    %cst_156 = arith.constant dense<0.000000e+00> : vector<4x32xf32>
    %264 = tpu.matmul %254, %12, %cst_156 {dimension_numbers = #tpu.dot_dimension_numbers<[1], [0], [0], [1], [0, 0, 1, 1], [], []>} : vector<4x9xf32>, vector<9x32xf32>, vector<4x32xf32> -> vector<4x32xf32>
    %265 = math.tanh %264 : vector<4x32xf32>
    %cst_157 = arith.constant dense<0.000000e+00> : vector<4x9xf32>
    %266 = tpu.matmul %265, %13, %cst_157 {dimension_numbers = #tpu.dot_dimension_numbers<[1], [0], [0], [1], [0, 0, 1, 1], [], []>} : vector<4x32xf32>, vector<32x9xf32>, vector<4x9xf32> -> vector<4x9xf32>
    %267 = arith.addf %266, %14 : vector<4x9xf32>
    %268 = arith.mulf %261, %267 : vector<4x9xf32>
    %269 = arith.addf %254, %268 : vector<4x9xf32>
    %cst_158 = arith.constant dense<0.000000e+00> : vector<4x32xf32>
    %270 = tpu.matmul %269, %12, %cst_158 {dimension_numbers = #tpu.dot_dimension_numbers<[1], [0], [0], [1], [0, 0, 1, 1], [], []>} : vector<4x9xf32>, vector<9x32xf32>, vector<4x32xf32> -> vector<4x32xf32>
    %271 = math.tanh %270 : vector<4x32xf32>
    %cst_159 = arith.constant dense<0.000000e+00> : vector<4x9xf32>
    %272 = tpu.matmul %271, %13, %cst_159 {dimension_numbers = #tpu.dot_dimension_numbers<[1], [0], [0], [1], [0, 0, 1, 1], [], []>} : vector<4x32xf32>, vector<32x9xf32>, vector<4x9xf32> -> vector<4x9xf32>
    %273 = arith.addf %272, %14 : vector<4x9xf32>
    %cst_160 = arith.constant 2.000000e+00 : f32
    %274 = vector.broadcast %cst_160 : f32 to vector<4x9xf32>
    %275 = arith.mulf %274, %273 : vector<4x9xf32>
    %276 = arith.addf %267, %275 : vector<4x9xf32>
    %277 = arith.mulf %261, %273 : vector<4x9xf32>
    %278 = arith.addf %254, %277 : vector<4x9xf32>
    %cst_161 = arith.constant dense<0.000000e+00> : vector<4x32xf32>
    %279 = tpu.matmul %278, %12, %cst_161 {dimension_numbers = #tpu.dot_dimension_numbers<[1], [0], [0], [1], [0, 0, 1, 1], [], []>} : vector<4x9xf32>, vector<9x32xf32>, vector<4x32xf32> -> vector<4x32xf32>
    %280 = math.tanh %279 : vector<4x32xf32>
    %cst_162 = arith.constant dense<0.000000e+00> : vector<4x9xf32>
    %281 = tpu.matmul %280, %13, %cst_162 {dimension_numbers = #tpu.dot_dimension_numbers<[1], [0], [0], [1], [0, 0, 1, 1], [], []>} : vector<4x32xf32>, vector<32x9xf32>, vector<4x9xf32> -> vector<4x9xf32>
    %282 = arith.addf %281, %14 : vector<4x9xf32>
    %cst_163 = arith.constant 2.000000e+00 : f32
    %283 = vector.broadcast %cst_163 : f32 to vector<4x9xf32>
    %284 = arith.mulf %283, %282 : vector<4x9xf32>
    %285 = arith.addf %276, %284 : vector<4x9xf32>
    %286 = arith.mulf %259, %282 : vector<4x9xf32>
    %287 = arith.addf %254, %286 : vector<4x9xf32>
    %cst_164 = arith.constant dense<0.000000e+00> : vector<4x32xf32>
    %288 = tpu.matmul %287, %12, %cst_164 {dimension_numbers = #tpu.dot_dimension_numbers<[1], [0], [0], [1], [0, 0, 1, 1], [], []>} : vector<4x9xf32>, vector<9x32xf32>, vector<4x32xf32> -> vector<4x32xf32>
    %289 = math.tanh %288 : vector<4x32xf32>
    %cst_165 = arith.constant dense<0.000000e+00> : vector<4x9xf32>
    %290 = tpu.matmul %289, %13, %cst_165 {dimension_numbers = #tpu.dot_dimension_numbers<[1], [0], [0], [1], [0, 0, 1, 1], [], []>} : vector<4x32xf32>, vector<32x9xf32>, vector<4x9xf32> -> vector<4x9xf32>
    %291 = arith.addf %290, %14 : vector<4x9xf32>
    %292 = arith.addf %285, %291 : vector<4x9xf32>
    %293 = arith.mulf %263, %292 : vector<4x9xf32>
    %294 = arith.addf %254, %293 : vector<4x9xf32>
    %c7 = arith.constant 7 : index
    %c0_166 = arith.constant 0 : index
    %c0_167 = arith.constant 0 : index
    %295 = vector.load %arg12[%c7, %c0_166, %c0_167] : memref<8x4x9xf32, #tpu.memory_space<vmem>>, vector<1x4x9xf32>
    %296 = vector.shape_cast %295 : vector<1x4x9xf32> to vector<4x9xf32>
    %297 = vector.shape_cast %294 : vector<4x9xf32> to vector<1x4x9xf32>
    tpu.vector_store %arg12[%c7, %c0_166, %c0_167], %297 {strides = array<i32>} : memref<8x4x9xf32, #tpu.memory_space<vmem>>, vector<1x4x9xf32>,
    return
  }
}

</mosaic_0001>

<bundles_post_ra>
// kernel: tpu_custom_call.1
= control target key start
LH: loop header
LB: loop body
LE: loop exit
PB: predicated region body
PF: predicated region fallthrough
CT: control target
= control target key end

     0   :  { %17 = vsyncpa [#allocation3], 0  ;;  %s6537_s0 = inlined_call_operand.hbm [shape: f32[4,9], index: 0, kind: input, shape index: {}]   ;;  %s6538_s1 = inlined_call_operand.hbm [shape: f32[4,32], index: 1, kind: input, shape index: {}]   ;;  %s6539_s2 = inlined_call_operand.vmem [shape: f32[32,32], index: 2, kind: input, shape index: {}]   ;;  %s6540_s3 = inlined_call_operand.hbm [shape: f32[4,32], index: 3, kind: input, shape index: {}]   ;;  %s6541_s4 = inlined_call_operand.vmem [shape: f32[32,9], index: 4, kind: input, shape index: {}]   ;;  %s6542_s5 = inlined_call_operand.hbm [shape: f32[4,9], index: 5, kind: input, shape index: {}]   ;;  %s6543_s6 = inlined_call_operand.hbm [shape: f32[9,32], index: 6, kind: input, shape index: {}]   ;;  %s6544_s7 = inlined_call_operand.vmem [shape: f32[32,9], index: 7, kind: input, shape index: {}]   ;;  %s6545_s8 = inlined_call_operand.hbm [shape: f32[4,9], index: 8, kind: input, shape index: {}]   ;;  %s6546_s9 = inlined_call_operand.vmem [shape: f32[7,4,9], index: 9, kind: input, shape index: {}]   ;;  %s6547_s10 = inlined_call_operand.vmem [shape: f32[7,4,9], index: 10, kind: input, shape index: {}]   ;;  %s6548_s11 = inlined_call_operand.vmem [shape: f32[7,4,9], index: 11, kind: input, shape index: {}]   ;;  %s6549_s12 = inlined_call_operand.hbm [shape: f32[8,4,9], index: 12, kind: output, shape index: {}]  }
   0x1   :  { %18 = vsyncpa [#allocation6], 0 }
   0x2   :  { %19 = vsyncpa [#allocation9], 0 }
   0x3   :  { %20 = vsyncpa [#allocation12], 0 }
   0x4   :  { %21 = vsyncpa [#allocation4], 0  ;;  %s5661_s21 = smov [#allocation5]   ;;  %s5662_s23 = smov [#allocation8]  }
   0x5   :  { %s38_s22 = sshll.u32 %s5661_s21, 4  ;;  %s62_s24 = sshll.u32 %s5662_s23, 4  ;;  %s39_s22 = int_to_ptr.vmem [resolvable:$true] %s38_s22  ;;  %s63_s24 = int_to_ptr.vmem [resolvable:$true] %s62_s24 }
   0x6   :  { %s5519_s25 = scalar_lea.vmem %s39_s22, 64  ;;  %p5524_p1 = scmp.lt.s32.totalorder %s39_s22, %s39_s22 }
   0x7   :  { %p5520_p0 = scmp.ne.s32.totalorder %s39_s22, %s5519_s25  ;;  %p5525_p2 = scmp.lt.s32.totalorder %s5519_s25, %s5519_s25 }
   0x9   :  { %p5526_p3 = por %p5525_p2, %p5524_p1 }
   0xb   :  { %p5527_p4 = pnand %p5526_p3, %p5520_p0 }
   0xd   :  { %5530 = shalt.err (!%p5527_p4)
}
   0xe   :  { %41 = dma.hbm_to_vmem [thread:$0]  %s6538_s1, 64, %s39_s22, [#allocation6]  }
   0xf   :  { %s5539_s28 = scalar_lea.vmem %s63_s24, 64  ;;  %p5544_p6 = scmp.lt.s32.totalorder %s63_s24, %s63_s24 }
  0x10   :  { %p5540_p5 = scmp.ne.s32.totalorder %s63_s24, %s5539_s28  ;;  %p5545_p7 = scmp.lt.s32.totalorder %s5539_s28, %s5539_s28 }
  0x12   :  { %p5546_p8 = por %p5545_p7, %p5544_p6 }
  0x14   :  { %p5547_p9 = pnand %p5546_p8, %p5540_p5 }
  0x16   :  { %5550 = shalt.err (!%p5547_p9)
}
  0x17   :  { %65 = dma.hbm_to_vmem [thread:$0]  %s6542_s5, 64, %s63_s24, [#allocation9]  }
  0x18   :  { %s5663_s13 = smov [#allocation2]   ;;  %s5664_s15 = smov [#allocation7]  }
  0x19   :  { %s28_s14 = sshll.u32 %s5663_s13, 4  ;;  %s50_s16 = sshll.u32 %s5664_s15, 4  ;;  %s29_s14 = int_to_ptr.vmem [resolvable:$true] %s28_s14  ;;  %s51_s16 = int_to_ptr.vmem [resolvable:$true] %s50_s16 }
  0x1a   :  { %s5559_s17 = scalar_lea.vmem %s29_s14, 64  ;;  %p5564_p11 = scmp.lt.s32.totalorder %s29_s14, %s29_s14 }
  0x1b   :  { %p5560_p10 = scmp.ne.s32.totalorder %s29_s14, %s5559_s17  ;;  %p5565_p12 = scmp.lt.s32.totalorder %s5559_s17, %s5559_s17 }
  0x1d   :  { %p5566_p13 = por %p5565_p12, %p5564_p11 }
  0x1f   :  { %p5567_p0 = pnand %p5566_p13, %p5560_p10 }
  0x21   :  { %5570 = shalt.err (!%p5567_p0)
}
  0x22   :  { %31 = dma.hbm_to_vmem [thread:$0]  %s6537_s0, 64, %s29_s14, [#allocation3]  }
  0x23   :  { %s5579_s19 = scalar_lea.vmem %s51_s16, 64  ;;  %p5584_p2 = scmp.lt.s32.totalorder %s51_s16, %s51_s16 }
  0x24   :  { %p5580_p1 = scmp.ne.s32.totalorder %s51_s16, %s5579_s19  ;;  %p5585_p3 = scmp.lt.s32.totalorder %s5579_s19, %s5579_s19 }
  0x26   :  { %p5586_p4 = por %p5585_p3, %p5584_p2 }
  0x28   :  { %p5587_p5 = pnand %p5586_p4, %p5580_p1 }
  0x2a   :  { %5590 = shalt.err (!%p5587_p5)
}
  0x2b   :  { %53 = dma.hbm_to_vmem [thread:$0]  %s6540_s3, 64, %s51_s16, [#allocation6]  }
  0x2c   :  { %s5665_s21 = smov [#allocation10]  }
  0x2d   :  { %s71_s22 = sshll.u32 %s5665_s21, 4  ;;  %s72_s22 = int_to_ptr.vmem [resolvable:$true] %s71_s22 }
  0x2e   :  { %s5599_s23 = scalar_lea.vmem %s72_s22, 256  ;;  %p5604_p7 = scmp.lt.s32.totalorder %s72_s22, %s72_s22 }
  0x2f   :  { %p5600_p6 = scmp.ne.s32.totalorder %s72_s22, %s5599_s23  ;;  %p5605_p8 = scmp.lt.s32.totalorder %s5599_s23, %s5599_s23 }
  0x31   :  { %p5606_p9 = por %p5605_p8, %p5604_p7 }
  0x33   :  { %p5607_p10 = pnand %p5606_p9, %p5600_p6 }
  0x35   :  { %5610 = shalt.err (!%p5607_p10)
}
  0x36   :  { %s5666_s0 = smov 128   ;;  %s5667_s24 = smov 8  }
  0x37   :  { %77 = dma.hbm_to_vmem [thread:$0]  %s6543_s6, 256, %s72_s22, [#allocation9], %s5666_s0, %s5666_s0, %s5667_s24  }
  0x38   :  { %s5668_s27 = smov [#allocation11]  }
  0x39   :  { %s86_s28 = sshll.u32 %s5668_s27, 4  ;;  %s87_s28 = int_to_ptr.vmem [resolvable:$true] %s86_s28 }
  0x3a   :  { %s5619_s3 = scalar_lea.vmem %s87_s28, 64  ;;  %p5624_p12 = scmp.lt.s32.totalorder %s87_s28, %s87_s28 }
  0x3b   :  { %p5620_p11 = scmp.ne.s32.totalorder %s87_s28, %s5619_s3  ;;  %p5625_p13 = scmp.lt.s32.totalorder %s5619_s3, %s5619_s3 }
  0x3d   :  { %p5626_p0 = por %p5625_p13, %p5624_p12 }
  0x3f   :  { %p5627_p1 = pnand %p5626_p0, %p5620_p11 }
  0x41   :  { %5630 = shalt.err (!%p5627_p1)
}
  0x42   :  { %89 = dma.hbm_to_vmem [thread:$0]  %s6545_s8, 64, %s87_s28, [#allocation12]  }
  0x43   :  { %5651 = dma.done.wait [#allocation3], 64  }
  0x44   :  { %5652 = vsyncadd [#allocation3], 4294967232 }
  0x45   :  { %5653 = dma.done.wait [#allocation6], 128  }
  0x46   :  { %5654 = vsyncadd [#allocation6], 4294967168 }
  0x47   :  { %5655 = dma.done.wait [#allocation9], 320  }
  0x48   :  { %5656 = vsyncadd [#allocation9], 4294966976 }
  0x49   :  { %5657 = dma.done.wait [#allocation12], 64  }
  0x4a   :  { %5658 = vsyncadd [#allocation12], 4294967232  ;;  %v5669_v0 = vmov 0.0   ;;  %vm5670_vm0 = vmmov 0   ;;  %v118_v1 = vld [vmem:[%s6539_s2 + $0x18] sm:$0xff]  ;;  %v117_v2 = vld [vmem:[%s6539_s2 + $0x10] sm:$0xff] }
  0x4b   :  { %4907 = vmatprep.subr.mxu0 %v5669_v0  ;;  %4915 = vmatprep.mubr.msk.f32.mxu0 %vm5670_vm0, %v5669_v0  ;;  %v116_v3 = vld [vmem:[%s6539_s2 + $0x8] sm:$0xff]  ;;  %v115_v4 = vld [vmem:[%s6539_s2] sm:$0xff]  ;;  %vm120_vm1 = vcmask 261120   ;;  %v198_v6 = vld [vmem:[%s6541_s4 + $0x18] sm:$0xff]  ;;  %vm291_vm2 = vcmask 1040384   ;;  %vm282_vm3 = vcmask 68608  }
  0x4c   :  { %4918 = vmatprep.subr.mxu1 %v5669_v0  ;;  %4926 = vmatprep.mubr.msk.f32.mxu1 %vm5670_vm0, %v5669_v0  ;;  %v114_v5 = vld [vmem:[#allocation5] sm:$0xf]  ;;  %v197_v7 = vld [vmem:[%s6541_s4 + $0x10] sm:$0xff]  ;;  %v196_v8 = vld [vmem:[%s6541_s4 + $0x8] sm:$0xff]  ;;  %vm287_vm4 = vcmask 72704   ;;  %s5671_s25 = smov [#allocation13]  }
  0x4d   :  { %4908 = vmatpush3.msra.mxu0 %v118_v1  ;;  %4919 = vmatpush3.msra.mxu1 %v198_v6  ;;  %v195_v9 = vld [vmem:[%s6541_s4] sm:$0xff]  ;;  %v119_v10 = vld [vmem:[#allocation7] sm:$0xf]  ;;  %v5801_v15 = vld [vmem:[#allocation10 + $0x8] sm:$0x1]  ;;  %s4554_s26 = sshll.u32 %s5671_s25, 4  ;;  %s4555_s26 = int_to_ptr.vmem [resolvable:$true] %s4554_s26 }
  0x4e   :  { %4909 = vmatprep.subr.mxu0 %v5669_v0  ;;  %4920 = vmatprep.subr.mxu1 %v5669_v0  ;;  %v5808_v16 = vld [vmem:[#allocation10] sm:$0xff]  ;;  %v199_v17 = vld [vmem:[#allocation8] sm:$0xf]  ;;  %v273_v19 = vld [vmem:[#allocation2] sm:$0xf]  ;;  %s5631_s27 = scalar_lea.vmem %s4555_s26, 512  ;;  %p5636_p3 = scmp.lt.s32.totalorder %s4555_s26, %s4555_s26 }
  0x4f   :  { %4910 = vmatpush3.msra.mxu0 %v117_v2  ;;  %4921 = vmatpush3.msra.mxu1 %v197_v7  ;;  %v5826_v23 = vld [vmem:[%s6544_s7 + $0x18] sm:$0xff]  ;;  %v5831_v24 = vld [vmem:[%s6544_s7 + $0x10] sm:$0xff]  ;;  %v5838_v25 = vld [vmem:[%s6544_s7 + $0x8] sm:$0xff]  ;;  %p5632_p2 = scmp.ne.s32.totalorder %s4555_s26, %s5631_s27  ;;  %p5637_p4 = scmp.lt.s32.totalorder %s5631_s27, %s5631_s27 }
  0x50   :  { %4911 = vmatprep.subr.mxu0 %v5669_v0  ;;  %4922 = vmatprep.subr.mxu1 %v5669_v0  ;;  %v5845_v26 = vld [vmem:[%s6544_s7] sm:$0xff] }
  0x51   :  { %4912 = vmatpush3.msra.mxu0 %v116_v3  ;;  %4923 = vmatpush3.msra.mxu1 %v196_v8  ;;  %v5859_v30 = vld [vmem:[#allocation11] sm:$0xf]  ;;  %v4584_v8 = vld [vmem:[%s6547_s10 + $0x4] sm:$0xf]  ;;  %p5638_p5 = por %p5637_p4, %p5636_p3 }
  0x52   :  { %4913 = vmatprep.subr.mxu0 %v5669_v0  ;;  %4924 = vmatprep.subr.mxu1 %v5669_v0  ;;  %v285_v31 = vld [vmem:[%s6547_s10] sm:$0xf] }
  0x53   :  { %4914 = vmatpush3.msra.mxu0 %v115_v4  ;;  %4925 = vmatpush3.msra.mxu1 %v195_v9  ;;  %v284_v49 = vld [vmem:[%s6546_s9] sm:$0xf]  ;;  %p5639_p6 = pnand %p5638_p5, %p5632_p2 }
  0x54   :  { %4916 = vmatmul.mubr.msk.f32.vlgmr.msra.gmra.mxu0 %vm120_vm1, %v114_v5  ;;  %4947 = vmatprep.subr.mxu0 %v5669_v0  ;;  %v286_v63 = vld [vmem:[%s6548_s11] sm:$0xf] }
  0x55   :  { %4951 = vmatprep.mubr.msk.f32.mxu0 %vm5670_vm0, %v5669_v0  ;;  %4929 = vmatprep.subr.mxu1 %v5669_v0 }
  0x56   :  { %4948 = vmatpush3.msk.msra.mxu0 %vm291_vm2, %v5801_v15 }
  0x57   :  { %4949 = vmatprep.subr.mxu0 %v5669_v0 }
  0x58   :  { %4950 = vmatpush3.msra.mxu0 %v5808_v16 }
  0x59   :  { %4954 = vmatprep.subr.mxu0 %v5669_v0 }
 0x114   :  { %v190_v11 = vpop.f32.mrf.mxu0 }
 0x115   :  { %v191_v12 = vadd.f32 %v190_v11, %v119_v10 }
 0x116   :  { %v4917_v13 = vpop.f32.mrf.mxu0 }
 0x117   :  { %5446 = vtanh.f32 %v191_v12 }
 0x124   :  { %v5447_v14 = vpop.eup %5446 }
 0x125   :  { %4927 = vmatmul.mubr.msk.f32.vlgmr.msra.gmra.mxu1 %vm120_vm1, %v5447_v14 }
 0x126   :  { %4933 = vmatprep.mubr.msk.f32.mxu1 %vm5670_vm0, %v5669_v0  ;;  %4930 = vmatpush3.msk.msra.mxu1 %vm291_vm2, %v5801_v15 }
 0x127   :  { %4931 = vmatprep.subr.mxu1 %v5669_v0 }
 0x128   :  { %4932 = vmatpush3.msra.mxu1 %v5808_v16 }
 0x129   :  { %4936 = vmatprep.subr.mxu1 %v5669_v0 }
 0x1e5   :  { %v269_v18 = vpop.f32.mrf.mxu1 }
 0x1e6   :  { %v270_v20 = vadd.f32 %v269_v18, %v199_v17 }
 0x1e7   :  { %v4928_v21 = vpop.f32.mrf.mxu1 }
 0x1e8   :  { %v5815_v22 = vadd.f32 %v273_v19, %v270_v20 }
 0x1ea   :  { %283 = vst.msk [vmem:[#allocation13] sm:$0xf] %vm282_vm3, %v5815_v22  ;;  %4934 = vmatmul.mubr.msk.f32.vlgmr.msra.gmra.mxu1 %vm287_vm4, %v5815_v22 }
 0x1eb   :  { %4944 = vmatprep.mubr.msk.f32.mxu1 %vm5670_vm0, %v5669_v0  ;;  %4937 = vmatpush3.msra.mxu1 %v5826_v23 }
 0x1ec   :  { %4938 = vmatprep.subr.mxu1 %v5669_v0 }
 0x1ed   :  { %4939 = vmatpush3.msra.mxu1 %v5831_v24 }
 0x1ee   :  { %4940 = vmatprep.subr.mxu1 %v5669_v0 }
 0x1ef   :  { %4941 = vmatpush3.msra.mxu1 %v5838_v25 }
 0x1f0   :  { %4942 = vmatprep.subr.mxu1 %v5669_v0 }
 0x1f1   :  { %4943 = vmatpush3.msra.mxu1 %v5845_v26 }
 0x1f2   :  { %4965 = vmatprep.subr.mxu1 %v5669_v0 }
 0x2aa   :  { %v361_v27 = vpop.f32.mrf.mxu1 }
 0x2ab   :  { %5448 = vtanh.f32 %v361_v27 }
 0x2ac   :  { %v4935_v28 = vpop.f32.mrf.mxu1 }
 0x2b8   :  { %v5449_v29 = vpop.eup %5448 }
 0x2b9   :  { %4945 = vmatmul.mubr.msk.f32.vlgmr.msra.gmra.mxu1 %vm120_vm1, %v5449_v29 }
 0x2ba   :  { %4966 = vmatpush3.msk.msra.mxu1 %vm291_vm2, %v5801_v15  ;;  %4969 = vmatprep.mubr.msk.f32.mxu1 %vm5670_vm0, %v5669_v0 }
 0x2bb   :  { %4967 = vmatprep.subr.mxu1 %v5669_v0 }
 0x2bc   :  { %4968 = vmatpush3.msra.mxu1 %v5808_v16 }
 0x2bd   :  { %4972 = vmatprep.subr.mxu1 %v5669_v0 }
 0x379   :  { %v435_v32 = vpop.f32.mrf.mxu1 }
 0x37a   :  { %v436_v33 = vadd.f32 %v435_v32, %v5859_v30 }
 0x37b   :  { %v4946_v34 = vpop.f32.mrf.mxu1 }
 0x37c   :  { %v439_v35 = vmul.f32 %v436_v33, %v285_v31 }
 0x37e   :  { %v440_v36 = vadd.f32 %v439_v35, %v5815_v22 }
 0x380   :  { %4952 = vmatmul.mubr.msk.f32.vlgmr.msra.gmra.mxu0 %vm287_vm4, %v440_v36 }
 0x381   :  { %4955 = vmatpush3.msra.mxu0 %v5826_v23  ;;  %4962 = vmatprep.mubr.msk.f32.mxu0 %vm5670_vm0, %v5669_v0 }
 0x382   :  { %4956 = vmatprep.subr.mxu0 %v5669_v0 }
 0x383   :  { %4957 = vmatpush3.msra.mxu0 %v5831_v24 }
 0x384   :  { %4958 = vmatprep.subr.mxu0 %v5669_v0 }
 0x385   :  { %4959 = vmatpush3.msra.mxu0 %v5838_v25 }
 0x386   :  { %4960 = vmatprep.subr.mxu0 %v5669_v0 }
 0x387   :  { %4961 = vmatpush3.msra.mxu0 %v5845_v26 }
 0x388   :  { %4983 = vmatprep.subr.mxu0 %v5669_v0 }
 0x440   :  { %v510_v37 = vpop.f32.mrf.mxu0 }
 0x441   :  { %5450 = vtanh.f32 %v510_v37 }
 0x442   :  { %v4953_v38 = vpop.f32.mrf.mxu0 }
 0x44e   :  { %v5451_v39 = vpop.eup %5450 }
 0x44f   :  { %4963 = vmatmul.mubr.msk.f32.vlgmr.msra.gmra.mxu0 %vm120_vm1, %v5451_v39 }
 0x450   :  { %4984 = vmatpush3.msk.msra.mxu0 %vm291_vm2, %v5801_v15  ;;  %4987 = vmatprep.mubr.msk.f32.mxu0 %vm5670_vm0, %v5669_v0 }
 0x451   :  { %4985 = vmatprep.subr.mxu0 %v5669_v0 }
 0x452   :  { %4986 = vmatpush3.msra.mxu0 %v5808_v16 }
 0x453   :  { %4990 = vmatprep.subr.mxu0 %v5669_v0 }
 0x50f   :  { %v584_v40 = vpop.f32.mrf.mxu0 }
 0x510   :  { %v585_v41 = vadd.f32 %v584_v40, %v5859_v30 }
 0x511   :  { %v4964_v42 = vpop.f32.mrf.mxu0 }
 0x512   :  { %v590_v43 = vmul.f32 %v585_v41, %v285_v31  ;;  %v588_v48 = vmul.f32 2.0, %v585_v41 }
 0x514   :  { %v591_v44 = vadd.f32 %v590_v43, %v5815_v22  ;;  %v589_v53 = vadd.f32 %v588_v48, %v436_v33  ;;  %v4583_v33 = vld [vmem:[%s6546_s9 + $0x4] sm:$0xf] }
 0x516   :  { %4970 = vmatmul.mubr.msk.f32.vlgmr.msra.gmra.mxu1 %vm287_vm4, %v591_v44 }
 0x517   :  { %4973 = vmatpush3.msra.mxu1 %v5826_v23  ;;  %4980 = vmatprep.mubr.msk.f32.mxu1 %vm5670_vm0, %v5669_v0 }
 0x518   :  { %4974 = vmatprep.subr.mxu1 %v5669_v0 }
 0x519   :  { %4975 = vmatpush3.msra.mxu1 %v5831_v24 }
 0x51a   :  { %4976 = vmatprep.subr.mxu1 %v5669_v0 }
 0x51b   :  { %4977 = vmatpush3.msra.mxu1 %v5838_v25 }
 0x51c   :  { %4978 = vmatprep.subr.mxu1 %v5669_v0 }
 0x51d   :  { %4979 = vmatpush3.msra.mxu1 %v5845_v26 }
 0x51e   :  { %5001 = vmatprep.subr.mxu1 %v5669_v0 }
 0x5d6   :  { %v661_v45 = vpop.f32.mrf.mxu1 }
 0x5d7   :  { %5452 = vtanh.f32 %v661_v45 }
 0x5d8   :  { %v4971_v46 = vpop.f32.mrf.mxu1 }
 0x5e4   :  { %v5453_v47 = vpop.eup %5452 }
 0x5e5   :  { %4981 = vmatmul.mubr.msk.f32.vlgmr.msra.gmra.mxu1 %vm120_vm1, %v5453_v47  ;;  %v4585_v47 = vld [vmem:[%s6548_s11 + $0x4] sm:$0xf] }
 0x5e6   :  { %5002 = vmatpush3.msk.msra.mxu1 %vm291_vm2, %v5801_v15  ;;  %5005 = vmatprep.mubr.msk.f32.mxu1 %vm5670_vm0, %v5669_v0 }
 0x5e7   :  { %5003 = vmatprep.subr.mxu1 %v5669_v0 }
 0x5e8   :  { %5004 = vmatpush3.msra.mxu1 %v5808_v16 }
 0x5e9   :  { %5008 = vmatprep.subr.mxu1 %v5669_v0 }
 0x6a5   :  { %v735_v50 = vpop.f32.mrf.mxu1 }
 0x6a6   :  { %v736_v51 = vadd.f32 %v735_v50, %v5859_v30 }
 0x6a7   :  { %v4982_v52 = vpop.f32.mrf.mxu1 }
 0x6a8   :  { %v739_v54 = vmul.f32 2.0, %v736_v51  ;;  %v741_v55 = vmul.f32 %v736_v51, %v284_v49 }
 0x6aa   :  { %v742_v56 = vadd.f32 %v741_v55, %v5815_v22  ;;  %v740_v57 = vadd.f32 %v739_v54, %v589_v53  ;;  %v4599_v55 = vld [vmem:[%s6547_s10 + $0x8] sm:$0xf] }
 0x6ac   :  { %4988 = vmatmul.mubr.msk.f32.vlgmr.msra.gmra.mxu0 %vm287_vm4, %v742_v56 }
 0x6ad   :  { %4991 = vmatpush3.msra.mxu0 %v5826_v23  ;;  %4998 = vmatprep.mubr.msk.f32.mxu0 %vm5670_vm0, %v5669_v0 }
 0x6ae   :  { %4992 = vmatprep.subr.mxu0 %v5669_v0 }
 0x6af   :  { %4993 = vmatpush3.msra.mxu0 %v5831_v24 }
 0x6b0   :  { %4994 = vmatprep.subr.mxu0 %v5669_v0 }
 0x6b1   :  { %4995 = vmatpush3.msra.mxu0 %v5838_v25 }
 0x6b2   :  { %4996 = vmatprep.subr.mxu0 %v5669_v0 }
 0x6b3   :  { %4997 = vmatpush3.msra.mxu0 %v5845_v26 }
 0x6b4   :  { %5019 = vmatprep.subr.mxu0 %v5669_v0 }
 0x76c   :  { %v812_v58 = vpop.f32.mrf.mxu0 }
 0x76d   :  { %5454 = vtanh.f32 %v812_v58 }
 0x76e   :  { %v4989_v59 = vpop.f32.mrf.mxu0 }
 0x77a   :  { %v5455_v60 = vpop.eup %5454 }
 0x77b   :  { %4999 = vmatmul.mubr.msk.f32.vlgmr.msra.gmra.mxu0 %vm120_vm1, %v5455_v60 }
 0x77c   :  { %5020 = vmatpush3.msk.msra.mxu0 %vm291_vm2, %v5801_v15  ;;  %5023 = vmatprep.mubr.msk.f32.mxu0 %vm5670_vm0, %v5669_v0 }
 0x77d   :  { %5021 = vmatprep.subr.mxu0 %v5669_v0 }
 0x77e   :  { %5022 = vmatpush3.msra.mxu0 %v5808_v16 }
 0x77f   :  { %5026 = vmatprep.subr.mxu0 %v5669_v0 }
 0x83b   :  { %v886_v61 = vpop.f32.mrf.mxu0 }
 0x83c   :  { %v887_v62 = vadd.f32 %v886_v61, %v5859_v30 }
 0x83d   :  { %v5000_v1 = vpop.f32.mrf.mxu0 }
 0x83e   :  { %v890_v2 = vadd.f32 %v887_v62, %v740_v57 }
 0x840   :  { %v891_v3 = vmul.f32 %v890_v2, %v286_v63 }
 0x842   :  { %v5935_v4 = vadd.f32 %v891_v3, %v5815_v22 }
 0x844   :  { %894 = vst.msk [vmem:[#allocation13 + $0x4] sm:$0xf] %vm282_vm3, %v5935_v4  ;;  %5006 = vmatmul.mubr.msk.f32.vlgmr.msra.gmra.mxu1 %vm287_vm4, %v5935_v4 }
 0x845   :  { %5009 = vmatpush3.msra.mxu1 %v5826_v23  ;;  %5016 = vmatprep.mubr.msk.f32.mxu1 %vm5670_vm0, %v5669_v0 }
 0x846   :  { %5010 = vmatprep.subr.mxu1 %v5669_v0 }
 0x847   :  { %5011 = vmatpush3.msra.mxu1 %v5831_v24 }
 0x848   :  { %5012 = vmatprep.subr.mxu1 %v5669_v0 }
 0x849   :  { %5013 = vmatpush3.msra.mxu1 %v5838_v25 }
 0x84a   :  { %5014 = vmatprep.subr.mxu1 %v5669_v0 }
 0x84b   :  { %5015 = vmatpush3.msra.mxu1 %v5845_v26 }
 0x84c   :  { %5037 = vmatprep.subr.mxu1 %v5669_v0 }
 0x904   :  { %v970_v5 = vpop.f32.mrf.mxu1 }
 0x905   :  { %5456 = vtanh.f32 %v970_v5 }
 0x906   :  { %v5007_v6 = vpop.f32.mrf.mxu1 }
 0x912   :  { %v5457_v7 = vpop.eup %5456 }
 0x913   :  { %5017 = vmatmul.mubr.msk.f32.vlgmr.msra.gmra.mxu1 %vm120_vm1, %v5457_v7 }
 0x914   :  { %5038 = vmatpush3.msk.msra.mxu1 %vm291_vm2, %v5801_v15  ;;  %5041 = vmatprep.mubr.msk.f32.mxu1 %vm5670_vm0, %v5669_v0 }
 0x915   :  { %5039 = vmatprep.subr.mxu1 %v5669_v0 }
 0x916   :  { %5040 = vmatpush3.msra.mxu1 %v5808_v16 }
 0x917   :  { %5044 = vmatprep.subr.mxu1 %v5669_v0 }
 0x9d3   :  { %v1044_v9 = vpop.f32.mrf.mxu1 }
 0x9d4   :  { %v1045_v10 = vadd.f32 %v1044_v9, %v5859_v30 }
 0x9d5   :  { %v5018_v11 = vpop.f32.mrf.mxu1 }
 0x9d6   :  { %v1048_v12 = vmul.f32 %v4584_v8, %v1045_v10 }
 0x9d8   :  { %v1049_v13 = vadd.f32 %v1048_v12, %v5935_v4 }
 0x9da   :  { %5024 = vmatmul.mubr.msk.f32.vlgmr.msra.gmra.mxu0 %vm287_vm4, %v1049_v13 }
 0x9db   :  { %5027 = vmatpush3.msra.mxu0 %v5826_v23  ;;  %5034 = vmatprep.mubr.msk.f32.mxu0 %vm5670_vm0, %v5669_v0 }
 0x9dc   :  { %5028 = vmatprep.subr.mxu0 %v5669_v0 }
 0x9dd   :  { %5029 = vmatpush3.msra.mxu0 %v5831_v24 }
 0x9de   :  { %5030 = vmatprep.subr.mxu0 %v5669_v0 }
 0x9df   :  { %5031 = vmatpush3.msra.mxu0 %v5838_v25 }
 0x9e0   :  { %5032 = vmatprep.subr.mxu0 %v5669_v0 }
 0x9e1   :  { %5033 = vmatpush3.msra.mxu0 %v5845_v26 }
 0x9e2   :  { %5055 = vmatprep.subr.mxu0 %v5669_v0 }
 0xa9a   :  { %v1119_v14 = vpop.f32.mrf.mxu0 }
 0xa9b   :  { %5458 = vtanh.f32 %v1119_v14 }
 0xa9c   :  { %v5025_v17 = vpop.f32.mrf.mxu0 }
 0xaa8   :  { %v5459_v18 = vpop.eup %5458 }
 0xaa9   :  { %5035 = vmatmul.mubr.msk.f32.vlgmr.msra.gmra.mxu0 %vm120_vm1, %v5459_v18 }
 0xaaa   :  { %5056 = vmatpush3.msk.msra.mxu0 %vm291_vm2, %v5801_v15  ;;  %5059 = vmatprep.mubr.msk.f32.mxu0 %vm5670_vm0, %v5669_v0 }
 0xaab   :  { %5057 = vmatprep.subr.mxu0 %v5669_v0 }
 0xaac   :  { %5058 = vmatpush3.msra.mxu0 %v5808_v16 }
 0xaad   :  { %5062 = vmatprep.subr.mxu0 %v5669_v0 }
 0xb69   :  { %v1193_v19 = vpop.f32.mrf.mxu0 }
 0xb6a   :  { %v1194_v20 = vadd.f32 %v1193_v19, %v5859_v30 }
 0xb6b   :  { %v5036_v21 = vpop.f32.mrf.mxu0 }
 0xb6c   :  { %v1199_v22 = vmul.f32 %v4584_v8, %v1194_v20  ;;  %v1197_v32 = vmul.f32 2.0, %v1194_v20 }
 0xb6e   :  { %v1200_v27 = vadd.f32 %v1199_v22, %v5935_v4  ;;  %v1198_v37 = vadd.f32 %v1197_v32, %v1045_v10  ;;  %v4598_v10 = vld [vmem:[%s6546_s9 + $0x8] sm:$0xf] }
 0xb70   :  { %5042 = vmatmul.mubr.msk.f32.vlgmr.msra.gmra.mxu1 %vm287_vm4, %v1200_v27 }
 0xb71   :  { %5045 = vmatpush3.msra.mxu1 %v5826_v23  ;;  %5052 = vmatprep.mubr.msk.f32.mxu1 %vm5670_vm0, %v5669_v0 }
 0xb72   :  { %5046 = vmatprep.subr.mxu1 %v5669_v0 }
 0xb73   :  { %5047 = vmatpush3.msra.mxu1 %v5831_v24 }
 0xb74   :  { %5048 = vmatprep.subr.mxu1 %v5669_v0 }
 0xb75   :  { %5049 = vmatpush3.msra.mxu1 %v5838_v25 }
 0xb76   :  { %5050 = vmatprep.subr.mxu1 %v5669_v0 }
 0xb77   :  { %5051 = vmatpush3.msra.mxu1 %v5845_v26 }
 0xb78   :  { %5073 = vmatprep.subr.mxu1 %v5669_v0 }
 0xc30   :  { %v1270_v28 = vpop.f32.mrf.mxu1 }
 0xc31   :  { %5460 = vtanh.f32 %v1270_v28 }
 0xc32   :  { %v5043_v29 = vpop.f32.mrf.mxu1 }
 0xc3e   :  { %v5461_v31 = vpop.eup %5460 }
 0xc3f   :  { %5053 = vmatmul.mubr.msk.f32.vlgmr.msra.gmra.mxu1 %vm120_vm1, %v5461_v31  ;;  %v4600_v31 = vld [vmem:[%s6548_s11 + $0x8] sm:$0xf] }
 0xc40   :  { %5074 = vmatpush3.msk.msra.mxu1 %vm291_vm2, %v5801_v15  ;;  %5077 = vmatprep.mubr.msk.f32.mxu1 %vm5670_vm0, %v5669_v0 }
 0xc41   :  { %5075 = vmatprep.subr.mxu1 %v5669_v0 }
 0xc42   :  { %5076 = vmatpush3.msra.mxu1 %v5808_v16 }
 0xc43   :  { %5080 = vmatprep.subr.mxu1 %v5669_v0 }
 0xcff   :  { %v1344_v34 = vpop.f32.mrf.mxu1 }
 0xd00   :  { %v1345_v35 = vadd.f32 %v1344_v34, %v5859_v30 }
 0xd01   :  { %v5054_v36 = vpop.f32.mrf.mxu1 }
 0xd02   :  { %v1348_v38 = vmul.f32 2.0, %v1345_v35  ;;  %v1350_v39 = vmul.f32 %v4583_v33, %v1345_v35 }
 0xd04   :  { %v1351_v40 = vadd.f32 %v1350_v39, %v5935_v4  ;;  %v1349_v41 = vadd.f32 %v1348_v38, %v1198_v37  ;;  %v4614_v39 = vld [vmem:[%s6547_s10 + $0xc] sm:$0xf] }
 0xd06   :  { %5060 = vmatmul.mubr.msk.f32.vlgmr.msra.gmra.mxu0 %vm287_vm4, %v1351_v40 }
 0xd07   :  { %5063 = vmatpush3.msra.mxu0 %v5826_v23  ;;  %5070 = vmatprep.mubr.msk.f32.mxu0 %vm5670_vm0, %v5669_v0 }
 0xd08   :  { %5064 = vmatprep.subr.mxu0 %v5669_v0 }
 0xd09   :  { %5065 = vmatpush3.msra.mxu0 %v5831_v24 }
 0xd0a   :  { %5066 = vmatprep.subr.mxu0 %v5669_v0 }
 0xd0b   :  { %5067 = vmatpush3.msra.mxu0 %v5838_v25 }
 0xd0c   :  { %5068 = vmatprep.subr.mxu0 %v5669_v0 }
 0xd0d   :  { %5069 = vmatpush3.msra.mxu0 %v5845_v26 }
 0xd0e   :  { %5091 = vmatprep.subr.mxu0 %v5669_v0 }
 0xdc6   :  { %v1421_v42 = vpop.f32.mrf.mxu0 }
 0xdc7   :  { %5462 = vtanh.f32 %v1421_v42 }
 0xdc8   :  { %v5061_v43 = vpop.f32.mrf.mxu0 }
 0xdd4   :  { %v5463_v44 = vpop.eup %5462 }
 0xdd5   :  { %5071 = vmatmul.mubr.msk.f32.vlgmr.msra.gmra.mxu0 %vm120_vm1, %v5463_v44 }
 0xdd6   :  { %5092 = vmatpush3.msk.msra.mxu0 %vm291_vm2, %v5801_v15  ;;  %5095 = vmatprep.mubr.msk.f32.mxu0 %vm5670_vm0, %v5669_v0 }
 0xdd7   :  { %5093 = vmatprep.subr.mxu0 %v5669_v0 }
 0xdd8   :  { %5094 = vmatpush3.msra.mxu0 %v5808_v16 }
 0xdd9   :  { %5098 = vmatprep.subr.mxu0 %v5669_v0 }
 0xe95   :  { %v1495_v45 = vpop.f32.mrf.mxu0 }
 0xe96   :  { %v1496_v46 = vadd.f32 %v1495_v45, %v5859_v30 }
 0xe97   :  { %v5072_v48 = vpop.f32.mrf.mxu0 }
 0xe98   :  { %v1499_v49 = vadd.f32 %v1496_v46, %v1349_v41 }
 0xe9a   :  { %v1500_v50 = vmul.f32 %v4585_v47, %v1499_v49 }
 0xe9c   :  { %v6033_v51 = vadd.f32 %v1500_v50, %v5935_v4 }
 0xe9e   :  { %1503 = vst.msk [vmem:[#allocation13 + $0x8] sm:$0xf] %vm282_vm3, %v6033_v51  ;;  %5078 = vmatmul.mubr.msk.f32.vlgmr.msra.gmra.mxu1 %vm287_vm4, %v6033_v51 }
 0xe9f   :  { %5081 = vmatpush3.msra.mxu1 %v5826_v23  ;;  %5088 = vmatprep.mubr.msk.f32.mxu1 %vm5670_vm0, %v5669_v0 }
 0xea0   :  { %5082 = vmatprep.subr.mxu1 %v5669_v0 }
 0xea1   :  { %5083 = vmatpush3.msra.mxu1 %v5831_v24 }
 0xea2   :  { %5084 = vmatprep.subr.mxu1 %v5669_v0 }
 0xea3   :  { %5085 = vmatpush3.msra.mxu1 %v5838_v25 }
 0xea4   :  { %5086 = vmatprep.subr.mxu1 %v5669_v0 }
 0xea5   :  { %5087 = vmatpush3.msra.mxu1 %v5845_v26 }
 0xea6   :  { %5109 = vmatprep.subr.mxu1 %v5669_v0 }
 0xf5e   :  { %v1579_v52 = vpop.f32.mrf.mxu1 }
 0xf5f   :  { %5464 = vtanh.f32 %v1579_v52 }
 0xf60   :  { %v5079_v53 = vpop.f32.mrf.mxu1 }
 0xf6c   :  { %v5465_v54 = vpop.eup %5464 }
 0xf6d   :  { %5089 = vmatmul.mubr.msk.f32.vlgmr.msra.gmra.mxu1 %vm120_vm1, %v5465_v54 }
 0xf6e   :  { %5110 = vmatpush3.msk.msra.mxu1 %vm291_vm2, %v5801_v15  ;;  %5113 = vmatprep.mubr.msk.f32.mxu1 %vm5670_vm0, %v5669_v0 }
 0xf6f   :  { %5111 = vmatprep.subr.mxu1 %v5669_v0 }
 0xf70   :  { %5112 = vmatpush3.msra.mxu1 %v5808_v16 }
 0xf71   :  { %5116 = vmatprep.subr.mxu1 %v5669_v0 }
0x102d   :  { %v1653_v56 = vpop.f32.mrf.mxu1 }
0x102e   :  { %v1654_v57 = vadd.f32 %v1653_v56, %v5859_v30 }
0x102f   :  { %v5090_v58 = vpop.f32.mrf.mxu1 }
0x1030   :  { %v1657_v59 = vmul.f32 %v4599_v55, %v1654_v57 }
0x1032   :  { %v1658_v60 = vadd.f32 %v1657_v59, %v6033_v51 }
0x1034   :  { %5096 = vmatmul.mubr.msk.f32.vlgmr.msra.gmra.mxu0 %vm287_vm4, %v1658_v60 }
0x1035   :  { %5099 = vmatpush3.msra.mxu0 %v5826_v23  ;;  %5106 = vmatprep.mubr.msk.f32.mxu0 %vm5670_vm0, %v5669_v0 }
0x1036   :  { %5100 = vmatprep.subr.mxu0 %v5669_v0 }
0x1037   :  { %5101 = vmatpush3.msra.mxu0 %v5831_v24 }
0x1038   :  { %5102 = vmatprep.subr.mxu0 %v5669_v0 }
0x1039   :  { %5103 = vmatpush3.msra.mxu0 %v5838_v25 }
0x103a   :  { %5104 = vmatprep.subr.mxu0 %v5669_v0 }
0x103b   :  { %5105 = vmatpush3.msra.mxu0 %v5845_v26 }
0x103c   :  { %5127 = vmatprep.subr.mxu0 %v5669_v0 }
0x10f4   :  { %v1728_v61 = vpop.f32.mrf.mxu0 }
0x10f5   :  { %5466 = vtanh.f32 %v1728_v61 }
0x10f6   :  { %v5097_v62 = vpop.f32.mrf.mxu0 }
0x1102   :  { %v5467_v63 = vpop.eup %5466 }
0x1103   :  { %5107 = vmatmul.mubr.msk.f32.vlgmr.msra.gmra.mxu0 %vm120_vm1, %v5467_v63 }
0x1104   :  { %5128 = vmatpush3.msk.msra.mxu0 %vm291_vm2, %v5801_v15  ;;  %5131 = vmatprep.mubr.msk.f32.mxu0 %vm5670_vm0, %v5669_v0 }
0x1105   :  { %5129 = vmatprep.subr.mxu0 %v5669_v0 }
0x1106   :  { %5130 = vmatpush3.msra.mxu0 %v5808_v16 }
0x1107   :  { %5134 = vmatprep.subr.mxu0 %v5669_v0 }
0x11c3   :  { %v1802_v1 = vpop.f32.mrf.mxu0 }
0x11c4   :  { %v1803_v2 = vadd.f32 %v1802_v1, %v5859_v30 }
0x11c5   :  { %v5108_v3 = vpop.f32.mrf.mxu0 }
0x11c6   :  { %v1808_v4 = vmul.f32 %v4599_v55, %v1803_v2  ;;  %v1806_v9 = vmul.f32 2.0, %v1803_v2 }
0x11c8   :  { %v1809_v5 = vadd.f32 %v1808_v4, %v6033_v51  ;;  %v1807_v14 = vadd.f32 %v1806_v9, %v1654_v57  ;;  %v4613_v57 = vld [vmem:[%s6546_s9 + $0xc] sm:$0xf] }
0x11ca   :  { %5114 = vmatmul.mubr.msk.f32.vlgmr.msra.gmra.mxu1 %vm287_vm4, %v1809_v5 }
0x11cb   :  { %5117 = vmatpush3.msra.mxu1 %v5826_v23  ;;  %5124 = vmatprep.mubr.msk.f32.mxu1 %vm5670_vm0, %v5669_v0 }
0x11cc   :  { %5118 = vmatprep.subr.mxu1 %v5669_v0 }
0x11cd   :  { %5119 = vmatpush3.msra.mxu1 %v5831_v24 }
0x11ce   :  { %5120 = vmatprep.subr.mxu1 %v5669_v0 }
0x11cf   :  { %5121 = vmatpush3.msra.mxu1 %v5838_v25 }
0x11d0   :  { %5122 = vmatprep.subr.mxu1 %v5669_v0 }
0x11d1   :  { %5123 = vmatpush3.msra.mxu1 %v5845_v26 }
0x11d2   :  { %5145 = vmatprep.subr.mxu1 %v5669_v0 }
0x128a   :  { %v1879_v6 = vpop.f32.mrf.mxu1 }
0x128b   :  { %5468 = vtanh.f32 %v1879_v6 }
0x128c   :  { %v5115_v7 = vpop.f32.mrf.mxu1 }
0x1298   :  { %v5469_v8 = vpop.eup %5468 }
0x1299   :  { %5125 = vmatmul.mubr.msk.f32.vlgmr.msra.gmra.mxu1 %vm120_vm1, %v5469_v8  ;;  %v4615_v8 = vld [vmem:[%s6548_s11 + $0xc] sm:$0xf] }
0x129a   :  { %5146 = vmatpush3.msk.msra.mxu1 %vm291_vm2, %v5801_v15  ;;  %5149 = vmatprep.mubr.msk.f32.mxu1 %vm5670_vm0, %v5669_v0 }
0x129b   :  { %5147 = vmatprep.subr.mxu1 %v5669_v0 }
0x129c   :  { %5148 = vmatpush3.msra.mxu1 %v5808_v16 }
0x129d   :  { %5152 = vmatprep.subr.mxu1 %v5669_v0 }
0x1359   :  { %v1953_v11 = vpop.f32.mrf.mxu1 }
0x135a   :  { %v1954_v12 = vadd.f32 %v1953_v11, %v5859_v30 }
0x135b   :  { %v5126_v13 = vpop.f32.mrf.mxu1 }
0x135c   :  { %v1957_v17 = vmul.f32 2.0, %v1954_v12  ;;  %v1959_v18 = vmul.f32 %v4598_v10, %v1954_v12 }
0x135e   :  { %v1960_v19 = vadd.f32 %v1959_v18, %v6033_v51  ;;  %v1958_v20 = vadd.f32 %v1957_v17, %v1807_v14  ;;  %v4629_v18 = vld [vmem:[%s6547_s10 + $0x10] sm:$0xf] }
0x1360   :  { %5132 = vmatmul.mubr.msk.f32.vlgmr.msra.gmra.mxu0 %vm287_vm4, %v1960_v19 }
0x1361   :  { %5135 = vmatpush3.msra.mxu0 %v5826_v23  ;;  %5142 = vmatprep.mubr.msk.f32.mxu0 %vm5670_vm0, %v5669_v0 }
0x1362   :  { %5136 = vmatprep.subr.mxu0 %v5669_v0 }
0x1363   :  { %5137 = vmatpush3.msra.mxu0 %v5831_v24 }
0x1364   :  { %5138 = vmatprep.subr.mxu0 %v5669_v0 }
0x1365   :  { %5139 = vmatpush3.msra.mxu0 %v5838_v25 }
0x1366   :  { %5140 = vmatprep.subr.mxu0 %v5669_v0 }
0x1367   :  { %5141 = vmatpush3.msra.mxu0 %v5845_v26 }
0x1368   :  { %5163 = vmatprep.subr.mxu0 %v5669_v0 }
0x1420   :  { %v2030_v21 = vpop.f32.mrf.mxu0 }
0x1421   :  { %5470 = vtanh.f32 %v2030_v21 }
0x1422   :  { %v5133_v22 = vpop.f32.mrf.mxu0 }
0x142e   :  { %v5471_v27 = vpop.eup %5470 }
0x142f   :  { %5143 = vmatmul.mubr.msk.f32.vlgmr.msra.gmra.mxu0 %vm120_vm1, %v5471_v27 }
0x1430   :  { %5164 = vmatpush3.msk.msra.mxu0 %vm291_vm2, %v5801_v15  ;;  %5167 = vmatprep.mubr.msk.f32.mxu0 %vm5670_vm0, %v5669_v0 }
0x1431   :  { %5165 = vmatprep.subr.mxu0 %v5669_v0 }
0x1432   :  { %5166 = vmatpush3.msra.mxu0 %v5808_v16 }
0x1433   :  { %5170 = vmatprep.subr.mxu0 %v5669_v0 }
0x14ef   :  { %v2104_v28 = vpop.f32.mrf.mxu0 }
0x14f0   :  { %v2105_v29 = vadd.f32 %v2104_v28, %v5859_v30 }
0x14f1   :  { %v5144_v32 = vpop.f32.mrf.mxu0 }
0x14f2   :  { %v2108_v33 = vadd.f32 %v2105_v29, %v1958_v20 }
0x14f4   :  { %v2109_v34 = vmul.f32 %v4600_v31, %v2108_v33 }
0x14f6   :  { %v6131_v35 = vadd.f32 %v2109_v34, %v6033_v51 }
0x14f8   :  { %2112 = vst.msk [vmem:[#allocation13 + $0xc] sm:$0xf] %vm282_vm3, %v6131_v35  ;;  %5150 = vmatmul.mubr.msk.f32.vlgmr.msra.gmra.mxu1 %vm287_vm4, %v6131_v35 }
0x14f9   :  { %5153 = vmatpush3.msra.mxu1 %v5826_v23  ;;  %5160 = vmatprep.mubr.msk.f32.mxu1 %vm5670_vm0, %v5669_v0 }
0x14fa   :  { %5154 = vmatprep.subr.mxu1 %v5669_v0 }
0x14fb   :  { %5155 = vmatpush3.msra.mxu1 %v5831_v24 }
0x14fc   :  { %5156 = vmatprep.subr.mxu1 %v5669_v0 }
0x14fd   :  { %5157 = vmatpush3.msra.mxu1 %v5838_v25 }
0x14fe   :  { %5158 = vmatprep.subr.mxu1 %v5669_v0 }
0x14ff   :  { %5159 = vmatpush3.msra.mxu1 %v5845_v26 }
0x1500   :  { %5181 = vmatprep.subr.mxu1 %v5669_v0 }
0x15b8   :  { %v2188_v36 = vpop.f32.mrf.mxu1 }
0x15b9   :  { %5472 = vtanh.f32 %v2188_v36 }
0x15ba   :  { %v5151_v37 = vpop.f32.mrf.mxu1 }
0x15bb   :  { %v6291_v37 = vld [vmem:[#allocation10 + $0x8] sm:$0x1] }
0x15c6   :  { %v5473_v38 = vpop.eup %5472 }
0x15c7   :  { %5161 = vmatmul.mubr.msk.f32.vlgmr.msra.gmra.mxu1 %vm120_vm1, %v5473_v38 }
0x15c8   :  { %5182 = vmatpush3.msk.msra.mxu1 %vm291_vm2, %v5801_v15  ;;  %5185 = vmatprep.mubr.msk.f32.mxu1 %vm5670_vm0, %v5669_v0 }
0x15c9   :  { %5183 = vmatprep.subr.mxu1 %v5669_v0 }
0x15ca   :  { %5184 = vmatpush3.msra.mxu1 %v5808_v16 }
0x15cb   :  { %5188 = vmatprep.subr.mxu1 %v5669_v0 }
0x1687   :  { %v2262_v40 = vpop.f32.mrf.mxu1 }
0x1688   :  { %v2263_v41 = vadd.f32 %v2262_v40, %v5859_v30 }
0x1689   :  { %v5162_v42 = vpop.f32.mrf.mxu1 }
0x168a   :  { %v2266_v43 = vmul.f32 %v4614_v39, %v2263_v41 }
0x168c   :  { %v2267_v44 = vadd.f32 %v2266_v43, %v6131_v35 }
0x168e   :  { %5168 = vmatmul.mubr.msk.f32.vlgmr.msra.gmra.mxu0 %vm287_vm4, %v2267_v44 }
0x168f   :  { %5171 = vmatpush3.msra.mxu0 %v5826_v23  ;;  %5178 = vmatprep.mubr.msk.f32.mxu0 %vm5670_vm0, %v5669_v0 }
0x1690   :  { %5172 = vmatprep.subr.mxu0 %v5669_v0 }
0x1691   :  { %5173 = vmatpush3.msra.mxu0 %v5831_v24 }
0x1692   :  { %5174 = vmatprep.subr.mxu0 %v5669_v0 }
0x1693   :  { %5175 = vmatpush3.msra.mxu0 %v5838_v25 }
0x1694   :  { %5176 = vmatprep.subr.mxu0 %v5669_v0 }
0x1695   :  { %5177 = vmatpush3.msra.mxu0 %v5845_v26 }
0x1696   :  { %5199 = vmatprep.subr.mxu0 %v5669_v0 }
0x174e   :  { %v2337_v45 = vpop.f32.mrf.mxu0 }
0x174f   :  { %5474 = vtanh.f32 %v2337_v45 }
0x1750   :  { %v5169_v46 = vpop.f32.mrf.mxu0 }
0x1751   :  { %v6311_v46 = vld [vmem:[%s6544_s7 + $0x18] sm:$0xff] }
0x175c   :  { %v5475_v47 = vpop.eup %5474 }
0x175d   :  { %5179 = vmatmul.mubr.msk.f32.vlgmr.msra.gmra.mxu0 %vm120_vm1, %v5475_v47  ;;  %v6327_v47 = vld [vmem:[%s6544_s7 + $0x8] sm:$0xff] }
0x175e   :  { %5200 = vmatpush3.msk.msra.mxu0 %vm291_vm2, %v5801_v15  ;;  %5203 = vmatprep.mubr.msk.f32.mxu0 %vm5670_vm0, %v5669_v0 }
0x175f   :  { %5201 = vmatprep.subr.mxu0 %v5669_v0 }
0x1760   :  { %5202 = vmatpush3.msra.mxu0 %v5808_v16 }
0x1761   :  { %5206 = vmatprep.subr.mxu0 %v5669_v0 }
0x181d   :  { %v2411_v48 = vpop.f32.mrf.mxu0 }
0x181e   :  { %v2412_v49 = vadd.f32 %v2411_v48, %v5859_v30  ;;  %v6334_v48 = vld [vmem:[%s6544_s7] sm:$0xff] }
0x181f   :  { %v5180_v50 = vpop.f32.mrf.mxu0 }
0x1820   :  { %v2417_v51 = vmul.f32 %v4614_v39, %v2412_v49  ;;  %v2415_v56 = vmul.f32 2.0, %v2412_v49 }
0x1822   :  { %v2418_v52 = vadd.f32 %v2417_v51, %v6131_v35  ;;  %v2416_v61 = vadd.f32 %v2415_v56, %v2263_v41 }
0x1824   :  { %5186 = vmatmul.mubr.msk.f32.vlgmr.msra.gmra.mxu1 %vm287_vm4, %v2418_v52 }
0x1825   :  { %5189 = vmatpush3.msra.mxu1 %v5826_v23  ;;  %5196 = vmatprep.mubr.msk.f32.mxu1 %vm5670_vm0, %v5669_v0 }
0x1826   :  { %5190 = vmatprep.subr.mxu1 %v5669_v0 }
0x1827   :  { %5191 = vmatpush3.msra.mxu1 %v5831_v24 }
0x1828   :  { %5192 = vmatprep.subr.mxu1 %v5669_v0 }
0x1829   :  { %5193 = vmatpush3.msra.mxu1 %v5838_v25 }
0x182a   :  { %5194 = vmatprep.subr.mxu1 %v5669_v0 }
0x182b   :  { %5195 = vmatpush3.msra.mxu1 %v5845_v26 }
0x182c   :  { %5217 = vmatprep.subr.mxu1 %v5669_v0 }
0x18e4   :  { %v2488_v53 = vpop.f32.mrf.mxu1 }
0x18e5   :  { %5476 = vtanh.f32 %v2488_v53  ;;  %v6346_v53 = vld [vmem:[#allocation11] sm:$0xf] }
0x18e6   :  { %v5187_v54 = vpop.f32.mrf.mxu1 }
0x18f2   :  { %v5477_v55 = vpop.eup %5476 }
0x18f3   :  { %5197 = vmatmul.mubr.msk.f32.vlgmr.msra.gmra.mxu1 %vm120_vm1, %v5477_v55  ;;  %v4630_v55 = vld [vmem:[%s6548_s11 + $0x10] sm:$0xf] }
0x18f4   :  { %5218 = vmatpush3.msk.msra.mxu1 %vm291_vm2, %v5801_v15  ;;  %5221 = vmatprep.mubr.msk.f32.mxu1 %vm5670_vm0, %v5669_v0 }
0x18f5   :  { %5219 = vmatprep.subr.mxu1 %v5669_v0 }
0x18f6   :  { %5220 = vmatpush3.msra.mxu1 %v5808_v16 }
0x18f7   :  { %5224 = vmatprep.subr.mxu1 %v5669_v0 }
0x19b3   :  { %v2562_v58 = vpop.f32.mrf.mxu1 }
0x19b4   :  { %v2563_v59 = vadd.f32 %v2562_v58, %v5859_v30 }
0x19b5   :  { %v5198_v60 = vpop.f32.mrf.mxu1 }
0x19b6   :  { %v2566_v62 = vmul.f32 2.0, %v2563_v59  ;;  %v2568_v63 = vmul.f32 %v4613_v57, %v2563_v59 }
0x19b8   :  { %v2569_v1 = vadd.f32 %v2568_v63, %v6131_v35  ;;  %v2567_v2 = vadd.f32 %v2566_v62, %v2416_v61  ;;  %v4644_v63 = vld [vmem:[%s6547_s10 + $0x14] sm:$0xf] }
0x19ba   :  { %5204 = vmatmul.mubr.msk.f32.vlgmr.msra.gmra.mxu0 %vm287_vm4, %v2569_v1 }
0x19bb   :  { %5207 = vmatpush3.msra.mxu0 %v5826_v23  ;;  %5214 = vmatprep.mubr.msk.f32.mxu0 %vm5670_vm0, %v5669_v0 }
0x19bc   :  { %5208 = vmatprep.subr.mxu0 %v5669_v0 }
0x19bd   :  { %5209 = vmatpush3.msra.mxu0 %v5831_v24 }
0x19be   :  { %5210 = vmatprep.subr.mxu0 %v5669_v0 }
0x19bf   :  { %5211 = vmatpush3.msra.mxu0 %v5838_v25 }
0x19c0   :  { %5212 = vmatprep.subr.mxu0 %v5669_v0 }
0x19c1   :  { %5213 = vmatpush3.msra.mxu0 %v5845_v26 }
0x19c2   :  { %5235 = vmatprep.subr.mxu0 %v5669_v0 }
0x1a7a   :  { %v2639_v3 = vpop.f32.mrf.mxu0 }
0x1a7b   :  { %5478 = vtanh.f32 %v2639_v3 }
0x1a7c   :  { %v5205_v4 = vpop.f32.mrf.mxu0 }
0x1a88   :  { %v5479_v5 = vpop.eup %5478 }
0x1a89   :  { %5215 = vmatmul.mubr.msk.f32.vlgmr.msra.gmra.mxu0 %vm120_vm1, %v5479_v5 }
0x1a8a   :  { %5236 = vmatpush3.msk.msra.mxu0 %vm291_vm2, %v5801_v15  ;;  %5239 = vmatprep.mubr.msk.f32.mxu0 %vm5670_vm0, %v5669_v0 }
0x1a8b   :  { %5237 = vmatprep.subr.mxu0 %v5669_v0 }
0x1a8c   :  { %5238 = vmatpush3.msra.mxu0 %v5808_v16 }
0x1a8d   :  { %5242 = vmatprep.subr.mxu0 %v5669_v0 }
0x1b49   :  { %v2713_v6 = vpop.f32.mrf.mxu0 }
0x1b4a   :  { %v2714_v7 = vadd.f32 %v2713_v6, %v5859_v30 }
0x1b4b   :  { %v5216_v9 = vpop.f32.mrf.mxu0 }
0x1b4c   :  { %v2717_v10 = vadd.f32 %v2714_v7, %v2567_v2 }
0x1b4e   :  { %v2718_v11 = vmul.f32 %v4615_v8, %v2717_v10 }
0x1b50   :  { %v6229_v12 = vadd.f32 %v2718_v11, %v6131_v35 }
0x1b52   :  { %2721 = vst.msk [vmem:[#allocation13 + $0x10] sm:$0xf] %vm282_vm3, %v6229_v12  ;;  %5222 = vmatmul.mubr.msk.f32.vlgmr.msra.gmra.mxu1 %vm287_vm4, %v6229_v12 }
0x1b53   :  { %5225 = vmatpush3.msra.mxu1 %v5826_v23  ;;  %5232 = vmatprep.mubr.msk.f32.mxu1 %vm5670_vm0, %v5669_v0 }
0x1b54   :  { %5226 = vmatprep.subr.mxu1 %v5669_v0 }
0x1b55   :  { %5227 = vmatpush3.msra.mxu1 %v5831_v24 }
0x1b56   :  { %5228 = vmatprep.subr.mxu1 %v5669_v0 }
0x1b57   :  { %5229 = vmatpush3.msra.mxu1 %v5838_v25 }
0x1b58   :  { %5230 = vmatprep.subr.mxu1 %v5669_v0 }
0x1b59   :  { %5231 = vmatpush3.msra.mxu1 %v5845_v26 }
0x1b5a   :  { %5253 = vmatprep.subr.mxu1 %v5669_v0 }
0x1c12   :  { %v2797_v13 = vpop.f32.mrf.mxu1 }
0x1c13   :  { %5480 = vtanh.f32 %v2797_v13 }
0x1c14   :  { %v5223_v14 = vpop.f32.mrf.mxu1 }
0x1c20   :  { %v5481_v17 = vpop.eup %5480 }
0x1c21   :  { %5233 = vmatmul.mubr.msk.f32.vlgmr.msra.gmra.mxu1 %vm120_vm1, %v5481_v17 }
0x1c22   :  { %5254 = vmatpush3.msk.msra.mxu1 %vm291_vm2, %v5801_v15  ;;  %5257 = vmatprep.mubr.msk.f32.mxu1 %vm5670_vm0, %v5669_v0 }
0x1c23   :  { %5255 = vmatprep.subr.mxu1 %v5669_v0 }
0x1c24   :  { %5256 = vmatpush3.msra.mxu1 %v5808_v16 }
0x1c25   :  { %5260 = vmatprep.subr.mxu1 %v5669_v0 }
0x1ce1   :  { %v2871_v19 = vpop.f32.mrf.mxu1 }
0x1ce2   :  { %v2872_v20 = vadd.f32 %v2871_v19, %v5859_v30 }
0x1ce3   :  { %v5234_v21 = vpop.f32.mrf.mxu1 }
0x1ce4   :  { %v2875_v22 = vmul.f32 %v4629_v18, %v2872_v20 }
0x1ce6   :  { %v2876_v27 = vadd.f32 %v2875_v22, %v6229_v12 }
0x1ce8   :  { %5240 = vmatmul.mubr.msk.f32.vlgmr.msra.gmra.mxu0 %vm287_vm4, %v2876_v27 }
0x1ce9   :  { %5243 = vmatpush3.msra.mxu0 %v5826_v23  ;;  %5250 = vmatprep.mubr.msk.f32.mxu0 %vm5670_vm0, %v5669_v0 }
0x1cea   :  { %5244 = vmatprep.subr.mxu0 %v5669_v0 }
0x1ceb   :  { %5245 = vmatpush3.msra.mxu0 %v5831_v24 }
0x1cec   :  { %5246 = vmatprep.subr.mxu0 %v5669_v0 }
0x1ced   :  { %5247 = vmatpush3.msra.mxu0 %v5838_v25 }
0x1cee   :  { %5248 = vmatprep.subr.mxu0 %v5669_v0 }
0x1cef   :  { %5249 = vmatpush3.msra.mxu0 %v5845_v26 }
0x1cf0   :  { %5271 = vmatprep.subr.mxu0 %v5669_v0 }
0x1da8   :  { %v2946_v28 = vpop.f32.mrf.mxu0 }
0x1da9   :  { %5482 = vtanh.f32 %v2946_v28 }
0x1daa   :  { %v5241_v29 = vpop.f32.mrf.mxu0 }
0x1db6   :  { %v5483_v31 = vpop.eup %5482 }
0x1db7   :  { %5251 = vmatmul.mubr.msk.f32.vlgmr.msra.gmra.mxu0 %vm120_vm1, %v5483_v31 }
0x1db8   :  { %5272 = vmatpush3.msk.msra.mxu0 %vm291_vm2, %v5801_v15  ;;  %5275 = vmatprep.mubr.msk.f32.mxu0 %vm5670_vm0, %v5669_v0 }
0x1db9   :  { %5273 = vmatprep.subr.mxu0 %v5669_v0 }
0x1dba   :  { %5274 = vmatpush3.msra.mxu0 %v5808_v16 }
0x1dbb   :  { %5278 = vmatprep.subr.mxu0 %v5669_v0 }
0x1e77   :  { %v3020_v32 = vpop.f32.mrf.mxu0 }
0x1e78   :  { %v3021_v33 = vadd.f32 %v3020_v32, %v5859_v30 }
0x1e79   :  { %v5252_v34 = vpop.f32.mrf.mxu0 }
0x1e7a   :  { %v3026_v35 = vmul.f32 %v4629_v18, %v3021_v33 }
0x1e7c   :  { %v3027_v36 = vadd.f32 %v3026_v35, %v6229_v12 }
0x1e7e   :  { %5258 = vmatmul.mubr.msk.f32.vlgmr.msra.gmra.mxu1 %vm287_vm4, %v3027_v36 }
0x1e7f   :  { %5261 = vmatpush3.msra.mxu1 %v5826_v23  ;;  %5268 = vmatprep.mubr.msk.f32.mxu1 %vm5670_vm0, %v5669_v0 }
0x1e80   :  { %5262 = vmatprep.subr.mxu1 %v5669_v0 }
0x1e81   :  { %5263 = vmatpush3.msra.mxu1 %v5831_v24  ;;  %v6298_v24 = vld [vmem:[#allocation10] sm:$0xff] }
0x1e82   :  { %5264 = vmatprep.subr.mxu1 %v5669_v0 }
0x1e83   :  { %5265 = vmatpush3.msra.mxu1 %v5838_v25  ;;  %v3024_v25 = vmul.f32 2.0, %v3021_v33 }
0x1e84   :  { %5266 = vmatprep.subr.mxu1 %v5669_v0 }
0x1e85   :  { %5267 = vmatpush3.msra.mxu1 %v5845_v26  ;;  %v4628_v26 = vld [vmem:[%s6546_s9 + $0x10] sm:$0xf]  ;;  %v3025_v41 = vadd.f32 %v3024_v25, %v2872_v20  ;;  %v4643_v20 = vld [vmem:[%s6546_s9 + $0x14] sm:$0xf] }
0x1e86   :  { %5289 = vmatprep.subr.mxu1 %v5669_v0 }
0x1f3e   :  { %v3097_v15 = vpop.f32.mrf.mxu1 }
0x1f3f   :  { %5484 = vtanh.f32 %v3097_v15 }
0x1f40   :  { %v5259_v16 = vpop.f32.mrf.mxu1 }
0x1f4c   :  { %v5485_v23 = vpop.eup %5484 }
0x1f4d   :  { %5269 = vmatmul.mubr.msk.f32.vlgmr.msra.gmra.mxu1 %vm120_vm1, %v5485_v23  ;;  %v4645_v23 = vld [vmem:[%s6548_s11 + $0x14] sm:$0xf] }
0x1f4e   :  { %5290 = vmatpush3.msk.msra.mxu1 %vm291_vm2, %v6291_v37  ;;  %5293 = vmatprep.mubr.msk.f32.mxu1 %vm5670_vm0, %v5669_v0 }
0x1f4f   :  { %5291 = vmatprep.subr.mxu1 %v5669_v0 }
0x1f50   :  { %5292 = vmatpush3.msra.mxu1 %v6298_v24 }
0x1f51   :  { %5296 = vmatprep.subr.mxu1 %v5669_v0 }
0x200d   :  { %v3171_v38 = vpop.f32.mrf.mxu1 }
0x200e   :  { %v3172_v39 = vadd.f32 %v3171_v38, %v5859_v30  ;;  %v6320_v30 = vld [vmem:[%s6544_s7 + $0x10] sm:$0xff] }
0x200f   :  { %v5270_v40 = vpop.f32.mrf.mxu1 }
0x2010   :  { %v3175_v42 = vmul.f32 2.0, %v3172_v39  ;;  %v3177_v43 = vmul.f32 %v4628_v26, %v3172_v39 }
0x2012   :  { %v3178_v44 = vadd.f32 %v3177_v43, %v6229_v12  ;;  %v3176_v45 = vadd.f32 %v3175_v42, %v3025_v41  ;;  %v4659_v43 = vld [vmem:[%s6547_s10 + $0x18] sm:$0xf] }
0x2014   :  { %5276 = vmatmul.mubr.msk.f32.vlgmr.msra.gmra.mxu0 %vm287_vm4, %v3178_v44 }
0x2015   :  { %5279 = vmatpush3.msra.mxu0 %v6311_v46  ;;  %5286 = vmatprep.mubr.msk.f32.mxu0 %vm5670_vm0, %v5669_v0 }
0x2016   :  { %5280 = vmatprep.subr.mxu0 %v5669_v0 }
0x2017   :  { %5281 = vmatpush3.msra.mxu0 %v6320_v30 }
0x2018   :  { %5282 = vmatprep.subr.mxu0 %v5669_v0 }
0x2019   :  { %5283 = vmatpush3.msra.mxu0 %v6327_v47 }
0x201a   :  { %5284 = vmatprep.subr.mxu0 %v5669_v0 }
0x201b   :  { %5285 = vmatpush3.msra.mxu0 %v6334_v48 }
0x201c   :  { %5307 = vmatprep.subr.mxu0 %v5669_v0 }
0x20d4   :  { %v3248_v49 = vpop.f32.mrf.mxu0 }
0x20d5   :  { %5486 = vtanh.f32 %v3248_v49 }
0x20d6   :  { %v5277_v50 = vpop.f32.mrf.mxu0 }
0x20e2   :  { %v5487_v51 = vpop.eup %5486 }
0x20e3   :  { %5287 = vmatmul.mubr.msk.f32.vlgmr.msra.gmra.mxu0 %vm120_vm1, %v5487_v51 }
0x20e4   :  { %5308 = vmatpush3.msk.msra.mxu0 %vm291_vm2, %v6291_v37  ;;  %5311 = vmatprep.mubr.msk.f32.mxu0 %vm5670_vm0, %v5669_v0 }
0x20e5   :  { %5309 = vmatprep.subr.mxu0 %v5669_v0 }
0x20e6   :  { %5310 = vmatpush3.msra.mxu0 %v6298_v24 }
0x20e7   :  { %5314 = vmatprep.subr.mxu0 %v5669_v0 }
0x21a3   :  { %v3322_v52 = vpop.f32.mrf.mxu0 }
0x21a4   :  { %v3323_v54 = vadd.f32 %v6346_v53, %v3322_v52 }
0x21a5   :  { %v5288_v56 = vpop.f32.mrf.mxu0 }
0x21a6   :  { %v3326_v57 = vadd.f32 %v3323_v54, %v3176_v45 }
0x21a8   :  { %v3327_v58 = vmul.f32 %v4630_v55, %v3326_v57 }
0x21aa   :  { %v6353_v59 = vadd.f32 %v3327_v58, %v6229_v12 }
0x21ac   :  { %3330 = vst.msk [vmem:[#allocation13 + $0x14] sm:$0xf] %vm282_vm3, %v6353_v59  ;;  %5294 = vmatmul.mubr.msk.f32.vlgmr.msra.gmra.mxu1 %vm287_vm4, %v6353_v59 }
0x21ad   :  { %5297 = vmatpush3.msra.mxu1 %v6311_v46  ;;  %5304 = vmatprep.mubr.msk.f32.mxu1 %vm5670_vm0, %v5669_v0 }
0x21ae   :  { %5298 = vmatprep.subr.mxu1 %v5669_v0 }
0x21af   :  { %5299 = vmatpush3.msra.mxu1 %v6320_v30 }
0x21b0   :  { %5300 = vmatprep.subr.mxu1 %v5669_v0 }
0x21b1   :  { %5301 = vmatpush3.msra.mxu1 %v6327_v47 }
0x21b2   :  { %5302 = vmatprep.subr.mxu1 %v5669_v0 }
0x21b3   :  { %5303 = vmatpush3.msra.mxu1 %v6334_v48 }
0x21b4   :  { %5325 = vmatprep.subr.mxu1 %v5669_v0 }
0x226c   :  { %v3406_v60 = vpop.f32.mrf.mxu1 }
0x226d   :  { %5488 = vtanh.f32 %v3406_v60 }
0x226e   :  { %v5295_v61 = vpop.f32.mrf.mxu1 }
0x227a   :  { %v5489_v62 = vpop.eup %5488 }
0x227b   :  { %5305 = vmatmul.mubr.msk.f32.vlgmr.msra.gmra.mxu1 %vm120_vm1, %v5489_v62 }
0x227c   :  { %5326 = vmatpush3.msk.msra.mxu1 %vm291_vm2, %v6291_v37  ;;  %5329 = vmatprep.mubr.msk.f32.mxu1 %vm5670_vm0, %v5669_v0 }
0x227d   :  { %5327 = vmatprep.subr.mxu1 %v5669_v0 }
0x227e   :  { %5328 = vmatpush3.msra.mxu1 %v6298_v24 }
0x227f   :  { %5332 = vmatprep.subr.mxu1 %v5669_v0 }
0x233b   :  { %v3480_v1 = vpop.f32.mrf.mxu1 }
0x233c   :  { %v3481_v2 = vadd.f32 %v6346_v53, %v3480_v1 }
0x233d   :  { %v5306_v3 = vpop.f32.mrf.mxu1 }
0x233e   :  { %v3484_v4 = vmul.f32 %v4644_v63, %v3481_v2 }
0x2340   :  { %v3485_v5 = vadd.f32 %v3484_v4, %v6353_v59 }
0x2342   :  { %5312 = vmatmul.mubr.msk.f32.vlgmr.msra.gmra.mxu0 %vm287_vm4, %v3485_v5 }
0x2343   :  { %5315 = vmatpush3.msra.mxu0 %v6311_v46  ;;  %5322 = vmatprep.mubr.msk.f32.mxu0 %vm5670_vm0, %v5669_v0 }
0x2344   :  { %5316 = vmatprep.subr.mxu0 %v5669_v0 }
0x2345   :  { %5317 = vmatpush3.msra.mxu0 %v6320_v30 }
0x2346   :  { %5318 = vmatprep.subr.mxu0 %v5669_v0 }
0x2347   :  { %5319 = vmatpush3.msra.mxu0 %v6327_v47 }
0x2348   :  { %5320 = vmatprep.subr.mxu0 %v5669_v0 }
0x2349   :  { %5321 = vmatpush3.msra.mxu0 %v6334_v48 }
0x234a   :  { %5343 = vmatprep.subr.mxu0 %v5669_v0 }
0x2402   :  { %v3555_v6 = vpop.f32.mrf.mxu0 }
0x2403   :  { %5490 = vtanh.f32 %v3555_v6 }
0x2404   :  { %v5313_v7 = vpop.f32.mrf.mxu0 }
0x2410   :  { %v5491_v8 = vpop.eup %5490 }
0x2411   :  { %5323 = vmatmul.mubr.msk.f32.vlgmr.msra.gmra.mxu0 %vm120_vm1, %v5491_v8 }
0x2412   :  { %5344 = vmatpush3.msk.msra.mxu0 %vm291_vm2, %v6291_v37  ;;  %5347 = vmatprep.mubr.msk.f32.mxu0 %vm5670_vm0, %v5669_v0 }
0x2413   :  { %5345 = vmatprep.subr.mxu0 %v5669_v0 }
0x2414   :  { %5346 = vmatpush3.msra.mxu0 %v6298_v24 }
0x2415   :  { %5350 = vmatprep.subr.mxu0 %v5669_v0 }
0x24d1   :  { %v3629_v9 = vpop.f32.mrf.mxu0 }
0x24d2   :  { %v3630_v10 = vadd.f32 %v6346_v53, %v3629_v9 }
0x24d3   :  { %v5324_v11 = vpop.f32.mrf.mxu0 }
0x24d4   :  { %v3635_v12 = vmul.f32 %v4644_v63, %v3630_v10  ;;  %v3633_v19 = vmul.f32 2.0, %v3630_v10  ;;  %v4658_v63 = vld [vmem:[%s6546_s9 + $0x18] sm:$0xf] }
0x24d6   :  { %v3636_v13 = vadd.f32 %v3635_v12, %v6353_v59  ;;  %v3634_v28 = vadd.f32 %v3633_v19, %v3481_v2 }
0x24d8   :  { %5330 = vmatmul.mubr.msk.f32.vlgmr.msra.gmra.mxu1 %vm287_vm4, %v3636_v13 }
0x24d9   :  { %5333 = vmatpush3.msra.mxu1 %v6311_v46  ;;  %5340 = vmatprep.mubr.msk.f32.mxu1 %vm5670_vm0, %v5669_v0 }
0x24da   :  { %5334 = vmatprep.subr.mxu1 %v5669_v0 }
0x24db   :  { %5335 = vmatpush3.msra.mxu1 %v6320_v30 }
0x24dc   :  { %5336 = vmatprep.subr.mxu1 %v5669_v0 }
0x24dd   :  { %5337 = vmatpush3.msra.mxu1 %v6327_v47 }
0x24de   :  { %5338 = vmatprep.subr.mxu1 %v5669_v0 }
0x24df   :  { %5339 = vmatpush3.msra.mxu1 %v6334_v48 }
0x24e0   :  { %5361 = vmatprep.subr.mxu1 %v5669_v0 }
0x2598   :  { %v3706_v14 = vpop.f32.mrf.mxu1 }
0x2599   :  { %5492 = vtanh.f32 %v3706_v14 }
0x259a   :  { %v5331_v17 = vpop.f32.mrf.mxu1 }
0x25a6   :  { %v5493_v18 = vpop.eup %5492 }
0x25a7   :  { %5341 = vmatmul.mubr.msk.f32.vlgmr.msra.gmra.mxu1 %vm120_vm1, %v5493_v18 }
0x25a8   :  { %5362 = vmatpush3.msk.msra.mxu1 %vm291_vm2, %v6291_v37  ;;  %5365 = vmatprep.mubr.msk.f32.mxu1 %vm5670_vm0, %v5669_v0 }
0x25a9   :  { %5363 = vmatprep.subr.mxu1 %v5669_v0 }
0x25aa   :  { %5364 = vmatpush3.msra.mxu1 %v6298_v24 }
0x25ab   :  { %5368 = vmatprep.subr.mxu1 %v5669_v0 }
0x2667   :  { %v3780_v21 = vpop.f32.mrf.mxu1 }
0x2668   :  { %v3781_v22 = vadd.f32 %v6346_v53, %v3780_v21 }
0x2669   :  { %v5342_v27 = vpop.f32.mrf.mxu1 }
0x266a   :  { %v3784_v29 = vmul.f32 2.0, %v3781_v22  ;;  %v3786_v31 = vmul.f32 %v4643_v20, %v3781_v22 }
0x266c   :  { %v3787_v32 = vadd.f32 %v3786_v31, %v6353_v59  ;;  %v3785_v33 = vadd.f32 %v3784_v29, %v3634_v28 }
0x266e   :  { %5348 = vmatmul.mubr.msk.f32.vlgmr.msra.gmra.mxu0 %vm287_vm4, %v3787_v32 }
0x266f   :  { %5351 = vmatpush3.msra.mxu0 %v6311_v46  ;;  %5358 = vmatprep.mubr.msk.f32.mxu0 %vm5670_vm0, %v5669_v0 }
0x2670   :  { %5352 = vmatprep.subr.mxu0 %v5669_v0 }
0x2671   :  { %5353 = vmatpush3.msra.mxu0 %v6320_v30 }
0x2672   :  { %5354 = vmatprep.subr.mxu0 %v5669_v0 }
0x2673   :  { %5355 = vmatpush3.msra.mxu0 %v6327_v47 }
0x2674   :  { %5356 = vmatprep.subr.mxu0 %v5669_v0 }
0x2675   :  { %5357 = vmatpush3.msra.mxu0 %v6334_v48 }
0x2676   :  { %5379 = vmatprep.subr.mxu0 %v5669_v0 }
0x272e   :  { %v3857_v34 = vpop.f32.mrf.mxu0 }
0x272f   :  { %5494 = vtanh.f32 %v3857_v34 }
0x2730   :  { %v5349_v35 = vpop.f32.mrf.mxu0 }
0x273c   :  { %v5495_v36 = vpop.eup %5494 }
0x273d   :  { %5359 = vmatmul.mubr.msk.f32.vlgmr.msra.gmra.mxu0 %vm120_vm1, %v5495_v36 }
0x273e   :  { %5380 = vmatpush3.msk.msra.mxu0 %vm291_vm2, %v6291_v37  ;;  %5383 = vmatprep.mubr.msk.f32.mxu0 %vm5670_vm0, %v5669_v0 }
0x273f   :  { %5381 = vmatprep.subr.mxu0 %v5669_v0 }
0x2740   :  { %5382 = vmatpush3.msra.mxu0 %v6298_v24 }
0x2741   :  { %5386 = vmatprep.subr.mxu0 %v5669_v0 }
0x27fd   :  { %v3931_v15 = vpop.f32.mrf.mxu0 }
0x27fe   :  { %v3932_v16 = vadd.f32 %v6346_v53, %v3931_v15 }
0x27ff   :  { %v5360_v25 = vpop.f32.mrf.mxu0 }
0x2800   :  { %v3935_v26 = vadd.f32 %v3932_v16, %v3785_v33 }
0x2802   :  { %v3936_v38 = vmul.f32 %v4645_v23, %v3935_v26 }
0x2804   :  { %v6451_v39 = vadd.f32 %v3936_v38, %v6353_v59 }
0x2806   :  { %3939 = vst.msk [vmem:[#allocation13 + $0x18] sm:$0xf] %vm282_vm3, %v6451_v39  ;;  %5366 = vmatmul.mubr.msk.f32.vlgmr.msra.gmra.mxu1 %vm287_vm4, %v6451_v39 }
0x2807   :  { %5369 = vmatpush3.msra.mxu1 %v6311_v46  ;;  %5376 = vmatprep.mubr.msk.f32.mxu1 %vm5670_vm0, %v5669_v0 }
0x2808   :  { %5370 = vmatprep.subr.mxu1 %v5669_v0 }
0x2809   :  { %5371 = vmatpush3.msra.mxu1 %v6320_v30 }
0x280a   :  { %5372 = vmatprep.subr.mxu1 %v5669_v0 }
0x280b   :  { %5373 = vmatpush3.msra.mxu1 %v6327_v47 }
0x280c   :  { %5374 = vmatprep.subr.mxu1 %v5669_v0 }
0x280d   :  { %5375 = vmatpush3.msra.mxu1 %v6334_v48 }
0x280e   :  { %5397 = vmatprep.subr.mxu1 %v5669_v0 }
0x28c6   :  { %v4015_v40 = vpop.f32.mrf.mxu1 }
0x28c7   :  { %5496 = vtanh.f32 %v4015_v40 }
0x28c8   :  { %v5367_v41 = vpop.f32.mrf.mxu1 }
0x28d4   :  { %v5497_v42 = vpop.eup %5496 }
0x28d5   :  { %5377 = vmatmul.mubr.msk.f32.vlgmr.msra.gmra.mxu1 %vm120_vm1, %v5497_v42 }
0x28d6   :  { %5398 = vmatpush3.msk.msra.mxu1 %vm291_vm2, %v6291_v37  ;;  %5401 = vmatprep.mubr.msk.f32.mxu1 %vm5670_vm0, %v5669_v0 }
0x28d7   :  { %5399 = vmatprep.subr.mxu1 %v5669_v0 }
0x28d8   :  { %5400 = vmatpush3.msra.mxu1 %v6298_v24 }
0x28d9   :  { %5404 = vmatprep.subr.mxu1 %v5669_v0 }
0x2995   :  { %v4089_v44 = vpop.f32.mrf.mxu1 }
0x2996   :  { %v4090_v45 = vadd.f32 %v6346_v53, %v4089_v44 }
0x2997   :  { %v5378_v49 = vpop.f32.mrf.mxu1 }
0x2998   :  { %v4093_v50 = vmul.f32 %v4659_v43, %v4090_v45 }
0x299a   :  { %v4094_v51 = vadd.f32 %v4093_v50, %v6451_v39 }
0x299c   :  { %5384 = vmatmul.mubr.msk.f32.vlgmr.msra.gmra.mxu0 %vm287_vm4, %v4094_v51 }
0x299d   :  { %5387 = vmatpush3.msra.mxu0 %v6311_v46  ;;  %5394 = vmatprep.mubr.msk.f32.mxu0 %vm5670_vm0, %v5669_v0 }
0x299e   :  { %5388 = vmatprep.subr.mxu0 %v5669_v0 }
0x299f   :  { %5389 = vmatpush3.msra.mxu0 %v6320_v30 }
0x29a0   :  { %5390 = vmatprep.subr.mxu0 %v5669_v0 }
0x29a1   :  { %5391 = vmatpush3.msra.mxu0 %v6327_v47 }
0x29a2   :  { %5392 = vmatprep.subr.mxu0 %v5669_v0 }
0x29a3   :  { %5393 = vmatpush3.msra.mxu0 %v6334_v48 }
0x29a4   :  { %5415 = vmatprep.subr.mxu0 %v5669_v0 }
0x2a5c   :  { %v4164_v52 = vpop.f32.mrf.mxu0 }
0x2a5d   :  { %5498 = vtanh.f32 %v4164_v52 }
0x2a5e   :  { %v5385_v54 = vpop.f32.mrf.mxu0 }
0x2a6a   :  { %v5499_v55 = vpop.eup %5498 }
0x2a6b   :  { %5395 = vmatmul.mubr.msk.f32.vlgmr.msra.gmra.mxu0 %vm120_vm1, %v5499_v55 }
0x2a6c   :  { %5416 = vmatpush3.msk.msra.mxu0 %vm291_vm2, %v6291_v37  ;;  %5419 = vmatprep.mubr.msk.f32.mxu0 %vm5670_vm0, %v5669_v0 }
0x2a6d   :  { %5417 = vmatprep.subr.mxu0 %v5669_v0 }
0x2a6e   :  { %5418 = vmatpush3.msra.mxu0 %v6298_v24 }
0x2a6f   :  { %5422 = vmatprep.subr.mxu0 %v5669_v0 }
0x2b2b   :  { %v4238_v56 = vpop.f32.mrf.mxu0 }
0x2b2c   :  { %v4239_v57 = vadd.f32 %v6346_v53, %v4238_v56 }
0x2b2d   :  { %v5396_v58 = vpop.f32.mrf.mxu0 }
0x2b2e   :  { %v4244_v59 = vmul.f32 %v4659_v43, %v4239_v57  ;;  %v4242_v62 = vmul.f32 2.0, %v4239_v57 }
0x2b30   :  { %v4245_v60 = vadd.f32 %v4244_v59, %v6451_v39  ;;  %v4243_v4 = vadd.f32 %v4242_v62, %v4090_v45 }
0x2b32   :  { %5402 = vmatmul.mubr.msk.f32.vlgmr.msra.gmra.mxu1 %vm287_vm4, %v4245_v60 }
0x2b33   :  { %5405 = vmatpush3.msra.mxu1 %v6311_v46  ;;  %5412 = vmatprep.mubr.msk.f32.mxu1 %vm5670_vm0, %v5669_v0 }
0x2b34   :  { %5406 = vmatprep.subr.mxu1 %v5669_v0 }
0x2b35   :  { %5407 = vmatpush3.msra.mxu1 %v6320_v30 }
0x2b36   :  { %5408 = vmatprep.subr.mxu1 %v5669_v0 }
0x2b37   :  { %5409 = vmatpush3.msra.mxu1 %v6327_v47 }
0x2b38   :  { %5410 = vmatprep.subr.mxu1 %v5669_v0 }
0x2b39   :  { %5411 = vmatpush3.msra.mxu1 %v6334_v48 }
0x2bf2   :  { %v4315_v37 = vpop.f32.mrf.mxu1 }
0x2bf3   :  { %5500 = vtanh.f32 %v4315_v37 }
0x2bf4   :  { %v5403_v24 = vpop.f32.mrf.mxu1 }
0x2c00   :  { %v5501_v61 = vpop.eup %5500 }
0x2c01   :  { %5413 = vmatmul.mubr.msk.f32.vlgmr.msra.gmra.mxu1 %vm120_vm1, %v5501_v61 }
0x2cc1   :  { %v4389_v1 = vpop.f32.mrf.mxu1 }
0x2cc2   :  { %v4390_v2 = vadd.f32 %v6346_v53, %v4389_v1 }
0x2cc3   :  { %v5414_v3 = vpop.f32.mrf.mxu1 }
0x2cc4   :  { %v4393_v5 = vmul.f32 2.0, %v4390_v2  ;;  %v4395_v6 = vmul.f32 %v4658_v63, %v4390_v2 }
0x2cc6   :  { %v4396_v7 = vadd.f32 %v4395_v6, %v6451_v39  ;;  %v4394_v8 = vadd.f32 %v4393_v5, %v4243_v4 }
0x2cc8   :  { %5420 = vmatmul.mubr.msk.f32.vlgmr.msra.gmra.mxu0 %vm287_vm4, %v4396_v7 }
0x2cc9   :  { %5423 = vmatpush3.msra.mxu0 %v6311_v46  ;;  %5430 = vmatprep.mubr.msk.f32.mxu0 %vm5670_vm0, %v5669_v0 }
0x2cca   :  { %5424 = vmatprep.subr.mxu0 %v5669_v0 }
0x2ccb   :  { %5425 = vmatpush3.msra.mxu0 %v6320_v30  ;;  %v4660_v30 = vld [vmem:[%s6548_s11 + $0x18] sm:$0xf] }
0x2ccc   :  { %5426 = vmatprep.subr.mxu0 %v5669_v0 }
0x2ccd   :  { %5427 = vmatpush3.msra.mxu0 %v6327_v47 }
0x2cce   :  { %5428 = vmatprep.subr.mxu0 %v5669_v0 }
0x2ccf   :  { %5429 = vmatpush3.msra.mxu0 %v6334_v48 }
0x2d88   :  { %v4466_v9 = vpop.f32.mrf.mxu0 }
0x2d89   :  { %5502 = vtanh.f32 %v4466_v9 }
0x2d8a   :  { %v5421_v10 = vpop.f32.mrf.mxu0 }
0x2d96   :  { %v5503_v11 = vpop.eup %5502 }
0x2d97   :  { %5431 = vmatmul.mubr.msk.f32.vlgmr.msra.gmra.mxu0 %vm120_vm1, %v5503_v11 }
0x2e57   :  { %v4540_v46 = vpop.f32.mrf.mxu0 }
0x2e58   :  { %v4541_v12 = vadd.f32 %v6346_v53, %v4540_v46 }
0x2e59   :  { %v5432_v13 = vpop.f32.mrf.mxu0 }
0x2e5a   :  { %v4544_v14 = vadd.f32 %v4541_v12, %v4394_v8 }
0x2e5c   :  { %v4545_v0 = vmul.f32 %v4660_v30, %v4544_v14 }
0x2e5e   :  { %v4546_v47 = vadd.f32 %v4545_v0, %v6451_v39 }
0x2e60   :  { %4548 = vst.msk [vmem:[#allocation13 + $0x1c] sm:$0xf] %vm282_vm3, %v4546_v47 }
0x2e61   :  { %5642 = shalt.err (!%p5639_p6)
}
0x2e62   :  { %s5672_s28 = smov 64   ;;  %s5673_s3 = smov 4  }
0x2e63   :  { %4560 = dma.vmem_to_hbm [thread:$0]  %s4555_s26, 512, %s6549_s12, [#allocation4], %s5672_s28, %s5672_s28, %s5673_s3  }
0x2e64   :  { %5659 = dma.done.wait [#allocation4], 512  }
0x2e65   :  { %5660 = vsyncadd [#allocation4], 4294966784 }
0x2e66   :  { %4564 = vsyncpa [#allocation3], 1 }
0x2e67   :  { %4565 = vsyncpa [#allocation6], 1 }
0x2e68   :  { %4566 = vsyncpa [#allocation9], 1 }
0x2e69   :  { %4567 = vsyncpa [#allocation12], 1 }
0x2e6a   :  { %4568 = vsyncpa [#allocation4], 1 }

</bundles_post_ra>
